<compile_context>
chip_gen: v7x
topology: tpu7x:2x2x1
jax: 0.10.0
libtpu: 0.0.40
codegen_flags: <defaults>
</compile_context>

<pallas_src>
import functools
import math

import jax
import jax.numpy as jnp
from jax.experimental import pallas as pl
from jax.experimental.pallas import tpu as pltpu


def _round_up(x, m):
    return ((x + m - 1) // m) * m


def _deep_fcn_kernel(x_ref,
                     w1, b1, w2, b2,
                     w3a, b3a, w3b, b3b, w3c, b3c,
                     w4, b4, w5, b5,
                     out_ref, *, compute_dtype):
    """Fused forward pass for one batch tile. All weights live fully in VMEM."""

    def linear(h, w_ref, b_ref):
        # compute_dtype operands on the MXU, f32 accumulation, f32 bias add.
        return jnp.dot(h, w_ref[...], preferred_element_type=jnp.float32) + b_ref[...]

    def linear_relu(h, w_ref, b_ref):
        return jnp.maximum(linear(h, w_ref, b_ref), 0.0).astype(compute_dtype)

    h = x_ref[...].astype(compute_dtype)
    h = linear_relu(h, w1, b1)      # fc1 + first_relu          : in  -> 256
    h = linear_relu(h, w2, b2)      # fc2 (Linear+ReLU)          : 256 -> 64
    h = linear_relu(h, w3a, b3a)    # fc3[0]                     : 64  -> 64
    h = linear_relu(h, w3b, b3b)    # fc3[1]                     : 64  -> 64
    h = linear_relu(h, w3c, b3c)    # fc3[2]                     : 64  -> 64
    h = linear_relu(h, w4, b4)      # fc4['fc4-1'] + fc4['relu'] : 64  -> 32
    y = linear(h, w5, b5)           # fc5 (no activation)        : 32  -> C_pad
    out_ref[...] = y.astype(out_ref.dtype)


def deep_fcn_forward(x, params, *, block_m=1024, compute_dtype=jnp.bfloat16):
    """x: (B, input_size) f32. params: dict of (in,out) weights and (1,out) biases.

    compute_dtype: MXU operand dtype (bf16 recommended on v6e/v7x, f32 on v5e).
    Accumulation and bias add are always f32.
    """
    B, input_size = x.shape
    num_classes = params["w5"].shape[1]

    # Lane-dense output: pad fc5 columns with zeros to a multiple of 128.
    c_pad = _round_up(max(num_classes, 1), 128)
    w5 = params["w5"]
    b5 = params["b5"]
    if c_pad != num_classes:
        w5 = jnp.pad(w5, ((0, 0), (0, c_pad - num_classes)))
        b5 = jnp.pad(b5, ((0, 0), (0, c_pad - num_classes)))

    def wcast(w):  # weights in compute_dtype (halves weight DMA/VMEM for bf16)
        return w.astype(compute_dtype)

    weight_args = (
        wcast(params["w1"]), params["b1"],
        wcast(params["w2"]), params["b2"],
        wcast(params["w3a"]), params["b3a"],
        wcast(params["w3b"]), params["b3b"],
        wcast(params["w3c"]), params["b3c"],
        wcast(params["w4"]), params["b4"],
        wcast(w5), b5,
    )

    # Large batch tile, multiple of 8 (sublanes), never larger than the padded batch.
    block_m = max(8, _round_up(min(block_m, _round_up(B, 8)), 8))
    grid = (pl.cdiv(B, block_m),)

    # x is tiled over batch; every weight/bias is a single full-array block whose
    # block index is constant -> copied into VMEM once and reused by all steps.
    def full_spec(arr):
        return pl.BlockSpec(arr.shape, lambda i: (0, 0))

    in_specs = [pl.BlockSpec((block_m, input_size), lambda i: (i, 0))]
    in_specs += [full_spec(a) for a in weight_args]
    out_specs = pl.BlockSpec((block_m, c_pad), lambda i: (i, 0))

    # Advisory cost estimate for XLA scheduling.
    per_row_flops = (input_size * 256 + 256 * 64 + 3 * 64 * 64 + 64 * 32 + 32 * c_pad)
    flops = 2 * B * per_row_flops
    bytes_accessed = (
        x.size * x.dtype.itemsize
        + sum(int(a.size) * a.dtype.itemsize for a in weight_args)
        + B * c_pad * 4
    )
    cost = pl.CostEstimate(flops=flops, transcendentals=0,
                           bytes_accessed=bytes_accessed)

    # Explicit scoped-VMEM budget: double-buffered x/out tiles + weights + live
    # intermediates (f32), with 2x headroom, clamped to the v7x physical cap.
    weight_bytes = sum(int(a.size) * a.dtype.itemsize for a in weight_args)
    vmem_bytes = (
        2 * block_m * input_size * 4          # x tile, double-buffered (f32 in HBM)
        + 2 * weight_bytes                    # grid-invariant, but allocated x2
        + 2 * block_m * c_pad * 4             # out tile, double-buffered
        + block_m * (256 + 2 * 64) * 4        # live f32 intermediates
    )
    vmem_limit = int(min(max(2 * vmem_bytes, 8 * 1024 * 1024), 64 * 1024 * 1024))

    out_padded = pl.pallas_call(
        functools.partial(_deep_fcn_kernel, compute_dtype=compute_dtype),
        out_shape=jax.ShapeDtypeStruct((B, c_pad), jnp.float32),
        grid_spec=pltpu.PrefetchScalarGridSpec(
            num_scalar_prefetch=0,
            grid=grid,
            in_specs=in_specs,
            out_specs=out_specs,
        ),
        compiler_params=pltpu.CompilerParams(
            dimension_semantics=("parallel",),
            vmem_limit_bytes=vmem_limit,
        ),
        cost_estimate=cost,
    )(x, *weight_args)

    # TODO(synk): for very large input_size (>=~512), K-tile fc1 over a second
    # "arbitrary" grid axis instead of loading the full (in, 256) block.
    return out_padded[:, :num_classes]


def init_deep_fcn_params(key, input_size, num_classes):
    """Deterministic init mimicking nn.Linear default (uniform(-1/sqrt(fan_in), ...)).
    Weights stored pre-transposed as (in, out); biases as (1, out)."""
    dims = [
        ("w1", "b1", input_size, 256),
        ("w2", "b2", 256, 64),
        ("w3a", "b3a", 64, 64),
        ("w3b", "b3b", 64, 64),
        ("w3c", "b3c", 64, 64),
        ("w4", "b4", 64, 32),
        ("w5", "b5", 32, num_classes),
    ]
    params = {}
    for wname, bname, fan_in, fan_out in dims:
        key, kw, kb = jax.random.split(key, 3)
        bound = 1.0 / math.sqrt(fan_in)
        params[wname] = jax.random.uniform(
            kw, (fan_in, fan_out), jnp.float32, minval=-bound, maxval=bound)
        params[bname] = jax.random.uniform(
            kb, (1, fan_out), jnp.float32, minval=-bound, maxval=bound)
    return params


def deep_fcn_reference(x, params):
    """Plain-JAX reference of the same forward pass (for verification)."""
    h = x
    for wn, bn in [("w1", "b1"), ("w2", "b2"), ("w3a", "b3a"),
                   ("w3b", "b3b"), ("w3c", "b3c"), ("w4", "b4")]:
        h = jnp.maximum(h @ params[wn] + params[bn], 0.0)
    return h @ params["w5"] + params["b5"]


if __name__ == "__main__":
    key = jax.random.PRNGKey(0)
    k_param, k_x = jax.random.split(key)

    batch = 256
    input_size = 32
    num_classes = 10

    params = init_deep_fcn_params(k_param, input_size, num_classes)
    x = jax.random.normal(k_x, (batch, input_size), jnp.float32)

    y_ref = deep_fcn_reference(x, params)

    # f32 operands: exact-path check against the JAX reference (2 grid steps so
    # both v7x TensorCores are exercised).
    y_f32 = deep_fcn_forward(x, params, block_m=128, compute_dtype=jnp.float32)
    y_f32 = jax.block_until_ready(y_f32)
    assert y_f32.shape == (batch, num_classes)
    assert jnp.allclose(y_f32, y_ref, atol=1e-4, rtol=1e-4), "f32 mismatch vs reference"

    # bf16 operands / f32 accumulation: the fast path on v6e/v7x, loose tolerance.
    y_bf16 = deep_fcn_forward(x, params, block_m=128, compute_dtype=jnp.bfloat16)
    y_bf16 = jax.block_until_ready(y_bf16)
    assert y_bf16.shape == (batch, num_classes)
    assert jnp.allclose(y_bf16, y_ref, atol=5e-2, rtol=5e-2), "bf16 mismatch vs reference"

    print("KERNEL_OK")
</pallas_src>

<mosaic_0001>
module attributes {stable_mosaic.version = 11 : i64} {
  func.func @_deep_fcn_kernel(%arg0: i32, %arg1: memref<128x32xf32, #tpu.memory_space<vmem>>, %arg2: memref<32x256xf32, #tpu.memory_space<vmem>>, %arg3: memref<1x256xf32, #tpu.memory_space<vmem>>, %arg4: memref<256x64xf32, #tpu.memory_space<vmem>>, %arg5: memref<1x64xf32, #tpu.memory_space<vmem>>, %arg6: memref<64x64xf32, #tpu.memory_space<vmem>>, %arg7: memref<1x64xf32, #tpu.memory_space<vmem>>, %arg8: memref<64x64xf32, #tpu.memory_space<vmem>>, %arg9: memref<1x64xf32, #tpu.memory_space<vmem>>, %arg10: memref<64x64xf32, #tpu.memory_space<vmem>>, %arg11: memref<1x64xf32, #tpu.memory_space<vmem>>, %arg12: memref<64x32xf32, #tpu.memory_space<vmem>>, %arg13: memref<1x32xf32, #tpu.memory_space<vmem>>, %arg14: memref<32x128xf32, #tpu.memory_space<vmem>>, %arg15: memref<1x128xf32, #tpu.memory_space<vmem>>, %arg16: memref<128x128xf32, #tpu.memory_space<vmem>>) attributes {dimension_semantics = [#tpu.dimension_semantics<parallel>], iteration_bounds = array<i64: 2>, scalar_prefetch = 0 : i64, scratch_operands = 0 : i64, tpu.core_type = #tpu.core_type<tc>, window_params = [{transform_indices = @transform_0, window_bounds = array<i64: 128, 32>}, {pipeline_mode = #tpu.pipeline_mode<synchronous>, transform_indices = @transform_1, window_bounds = array<i64: 32, 256>}, {pipeline_mode = #tpu.pipeline_mode<synchronous>, transform_indices = @transform_2, window_bounds = array<i64: 1, 256>}, {pipeline_mode = #tpu.pipeline_mode<synchronous>, transform_indices = @transform_3, window_bounds = array<i64: 256, 64>}, {pipeline_mode = #tpu.pipeline_mode<synchronous>, transform_indices = @transform_4, window_bounds = array<i64: 1, 64>}, {pipeline_mode = #tpu.pipeline_mode<synchronous>, transform_indices = @transform_5, window_bounds = array<i64: 64, 64>}, {pipeline_mode = #tpu.pipeline_mode<synchronous>, transform_indices = @transform_6, window_bounds = array<i64: 1, 64>}, {pipeline_mode = #tpu.pipeline_mode<synchronous>, transform_indices = @transform_7, window_bounds = array<i64: 64, 64>}, {pipeline_mode = #tpu.pipeline_mode<synchronous>, transform_indices = @transform_8, window_bounds = array<i64: 1, 64>}, {pipeline_mode = #tpu.pipeline_mode<synchronous>, transform_indices = @transform_9, window_bounds = array<i64: 64, 64>}, {pipeline_mode = #tpu.pipeline_mode<synchronous>, transform_indices = @transform_10, window_bounds = array<i64: 1, 64>}, {pipeline_mode = #tpu.pipeline_mode<synchronous>, transform_indices = @transform_11, window_bounds = array<i64: 64, 32>}, {pipeline_mode = #tpu.pipeline_mode<synchronous>, transform_indices = @transform_12, window_bounds = array<i64: 1, 32>}, {pipeline_mode = #tpu.pipeline_mode<synchronous>, transform_indices = @transform_13, window_bounds = array<i64: 32, 128>}, {pipeline_mode = #tpu.pipeline_mode<synchronous>, transform_indices = @transform_14, window_bounds = array<i64: 1, 128>}, {transform_indices = @transform_15, window_bounds = array<i64: 128, 128>}]} {
    %c0 = arith.constant 0 : index
    %c0_0 = arith.constant 0 : index
    %0 = vector.load %arg1[%c0, %c0_0] : memref<128x32xf32, #tpu.memory_space<vmem>>, vector<128x32xf32>
    %c0_1 = arith.constant 0 : index
    %c0_2 = arith.constant 0 : index
    %1 = vector.load %arg2[%c0_1, %c0_2] : memref<32x256xf32, #tpu.memory_space<vmem>>, vector<32x256xf32>
    %cst = arith.constant dense<0.000000e+00> : vector<128x256xf32>
    %2 = tpu.matmul %0, %1, %cst {dimension_numbers = #tpu.dot_dimension_numbers<[1], [0], [0], [1], [0, 0, 1, 1], [], []>} : vector<128x32xf32>, vector<32x256xf32>, vector<128x256xf32> -> vector<128x256xf32>
    %c0_3 = arith.constant 0 : index
    %c0_4 = arith.constant 0 : index
    %3 = vector.load %arg3[%c0_3, %c0_4] : memref<1x256xf32, #tpu.memory_space<vmem>>, vector<1x256xf32>
    %4 = vector.broadcast %3 : vector<1x256xf32> to vector<128x256xf32>
    %5 = arith.addf %2, %4 : vector<128x256xf32>
    %cst_5 = arith.constant 0.000000e+00 : f32
    %6 = vector.broadcast %cst_5 : f32 to vector<128x256xf32>
    %7 = arith.maximumf %5, %6 : vector<128x256xf32>
    %c0_6 = arith.constant 0 : index
    %c0_7 = arith.constant 0 : index
    %8 = vector.load %arg4[%c0_6, %c0_7] : memref<256x64xf32, #tpu.memory_space<vmem>>, vector<256x64xf32>
    %cst_8 = arith.constant dense<0.000000e+00> : vector<128x64xf32>
    %9 = tpu.matmul %7, %8, %cst_8 {dimension_numbers = #tpu.dot_dimension_numbers<[1], [0], [0], [1], [0, 0, 1, 1], [], []>} : vector<128x256xf32>, vector<256x64xf32>, vector<128x64xf32> -> vector<128x64xf32>
    %c0_9 = arith.constant 0 : index
    %c0_10 = arith.constant 0 : index
    %10 = vector.load %arg5[%c0_9, %c0_10] : memref<1x64xf32, #tpu.memory_space<vmem>>, vector<1x64xf32>
    %11 = vector.broadcast %10 : vector<1x64xf32> to vector<128x64xf32>
    %12 = arith.addf %9, %11 : vector<128x64xf32>
    %cst_11 = arith.constant 0.000000e+00 : f32
    %13 = vector.broadcast %cst_11 : f32 to vector<128x64xf32>
    %14 = arith.maximumf %12, %13 : vector<128x64xf32>
    %c0_12 = arith.constant 0 : index
    %c0_13 = arith.constant 0 : index
    %15 = vector.load %arg6[%c0_12, %c0_13] : memref<64x64xf32, #tpu.memory_space<vmem>>, vector<64x64xf32>
    %cst_14 = arith.constant dense<0.000000e+00> : vector<128x64xf32>
    %16 = tpu.matmul %14, %15, %cst_14 {dimension_numbers = #tpu.dot_dimension_numbers<[1], [0], [0], [1], [0, 0, 1, 1], [], []>} : vector<128x64xf32>, vector<64x64xf32>, vector<128x64xf32> -> vector<128x64xf32>
    %c0_15 = arith.constant 0 : index
    %c0_16 = arith.constant 0 : index
    %17 = vector.load %arg7[%c0_15, %c0_16] : memref<1x64xf32, #tpu.memory_space<vmem>>, vector<1x64xf32>
    %18 = vector.broadcast %17 : vector<1x64xf32> to vector<128x64xf32>
    %19 = arith.addf %16, %18 : vector<128x64xf32>
    %cst_17 = arith.constant 0.000000e+00 : f32
    %20 = vector.broadcast %cst_17 : f32 to vector<128x64xf32>
    %21 = arith.maximumf %19, %20 : vector<128x64xf32>
    %c0_18 = arith.constant 0 : index
    %c0_19 = arith.constant 0 : index
    %22 = vector.load %arg8[%c0_18, %c0_19] : memref<64x64xf32, #tpu.memory_space<vmem>>, vector<64x64xf32>
    %cst_20 = arith.constant dense<0.000000e+00> : vector<128x64xf32>
    %23 = tpu.matmul %21, %22, %cst_20 {dimension_numbers = #tpu.dot_dimension_numbers<[1], [0], [0], [1], [0, 0, 1, 1], [], []>} : vector<128x64xf32>, vector<64x64xf32>, vector<128x64xf32> -> vector<128x64xf32>
    %c0_21 = arith.constant 0 : index
    %c0_22 = arith.constant 0 : index
    %24 = vector.load %arg9[%c0_21, %c0_22] : memref<1x64xf32, #tpu.memory_space<vmem>>, vector<1x64xf32>
    %25 = vector.broadcast %24 : vector<1x64xf32> to vector<128x64xf32>
    %26 = arith.addf %23, %25 : vector<128x64xf32>
    %cst_23 = arith.constant 0.000000e+00 : f32
    %27 = vector.broadcast %cst_23 : f32 to vector<128x64xf32>
    %28 = arith.maximumf %26, %27 : vector<128x64xf32>
    %c0_24 = arith.constant 0 : index
    %c0_25 = arith.constant 0 : index
    %29 = vector.load %arg10[%c0_24, %c0_25] : memref<64x64xf32, #tpu.memory_space<vmem>>, vector<64x64xf32>
    %cst_26 = arith.constant dense<0.000000e+00> : vector<128x64xf32>
    %30 = tpu.matmul %28, %29, %cst_26 {dimension_numbers = #tpu.dot_dimension_numbers<[1], [0], [0], [1], [0, 0, 1, 1], [], []>} : vector<128x64xf32>, vector<64x64xf32>, vector<128x64xf32> -> vector<128x64xf32>
    %c0_27 = arith.constant 0 : index
    %c0_28 = arith.constant 0 : index
    %31 = vector.load %arg11[%c0_27, %c0_28] : memref<1x64xf32, #tpu.memory_space<vmem>>, vector<1x64xf32>
    %32 = vector.broadcast %31 : vector<1x64xf32> to vector<128x64xf32>
    %33 = arith.addf %30, %32 : vector<128x64xf32>
    %cst_29 = arith.constant 0.000000e+00 : f32
    %34 = vector.broadcast %cst_29 : f32 to vector<128x64xf32>
    %35 = arith.maximumf %33, %34 : vector<128x64xf32>
    %c0_30 = arith.constant 0 : index
    %c0_31 = arith.constant 0 : index
    %36 = vector.load %arg12[%c0_30, %c0_31] : memref<64x32xf32, #tpu.memory_space<vmem>>, vector<64x32xf32>
    %cst_32 = arith.constant dense<0.000000e+00> : vector<128x32xf32>
    %37 = tpu.matmul %35, %36, %cst_32 {dimension_numbers = #tpu.dot_dimension_numbers<[1], [0], [0], [1], [0, 0, 1, 1], [], []>} : vector<128x64xf32>, vector<64x32xf32>, vector<128x32xf32> -> vector<128x32xf32>
    %c0_33 = arith.constant 0 : index
    %c0_34 = arith.constant 0 : index
    %38 = vector.load %arg13[%c0_33, %c0_34] : memref<1x32xf32, #tpu.memory_space<vmem>>, vector<1x32xf32>
    %39 = vector.broadcast %38 : vector<1x32xf32> to vector<128x32xf32>
    %40 = arith.addf %37, %39 : vector<128x32xf32>
    %cst_35 = arith.constant 0.000000e+00 : f32
    %41 = vector.broadcast %cst_35 : f32 to vector<128x32xf32>
    %42 = arith.maximumf %40, %41 : vector<128x32xf32>
    %c0_36 = arith.constant 0 : index
    %c0_37 = arith.constant 0 : index
    %43 = vector.load %arg14[%c0_36, %c0_37] : memref<32x128xf32, #tpu.memory_space<vmem>>, vector<32x128xf32>
    %cst_38 = arith.constant dense<0.000000e+00> : vector<128x128xf32>
    %44 = tpu.matmul %42, %43, %cst_38 {dimension_numbers = #tpu.dot_dimension_numbers<[1], [0], [0], [1], [0, 0, 1, 1], [], []>} : vector<128x32xf32>, vector<32x128xf32>, vector<128x128xf32> -> vector<128x128xf32>
    %c0_39 = arith.constant 0 : index
    %c0_40 = arith.constant 0 : index
    %45 = vector.load %arg15[%c0_39, %c0_40] : memref<1x128xf32, #tpu.memory_space<vmem>>, vector<1x128xf32>
    %46 = vector.broadcast %45 : vector<1x128xf32> to vector<128x128xf32>
    %47 = arith.addf %44, %46 : vector<128x128xf32>
    %c0_41 = arith.constant 0 : index
    %c0_42 = arith.constant 0 : index
    %48 = vector.load %arg16[%c0_41, %c0_42] : memref<128x128xf32, #tpu.memory_space<vmem>>, vector<128x128xf32>
    tpu.vector_store %arg16[%c0_41, %c0_42], %47 {strides = array<i32>} : memref<128x128xf32, #tpu.memory_space<vmem>>, vector<128x128xf32>,
    return
  }
  func.func @transform_0(%arg0: i32) -> (i32, i32) {
    %c0_i32 = arith.constant 0 : i32
    %c0_i32_0 = arith.constant 0 : i32
    return %arg0, %c0_i32 : i32, i32
  }
  func.func @transform_1(%arg0: i32) -> (i32, i32) {
    %c0_i32 = arith.constant 0 : i32
    %c0_i32_0 = arith.constant 0 : i32
    %c0_i32_1 = arith.constant 0 : i32
    return %c0_i32, %c0_i32_0 : i32, i32
  }
  func.func @transform_2(%arg0: i32) -> (i32, i32) {
    %c0_i32 = arith.constant 0 : i32
    %c0_i32_0 = arith.constant 0 : i32
    %c0_i32_1 = arith.constant 0 : i32
    return %c0_i32, %c0_i32_0 : i32, i32
  }
  func.func @transform_3(%arg0: i32) -> (i32, i32) {
    %c0_i32 = arith.constant 0 : i32
    %c0_i32_0 = arith.constant 0 : i32
    %c0_i32_1 = arith.constant 0 : i32
    return %c0_i32, %c0_i32_0 : i32, i32
  }
  func.func @transform_4(%arg0: i32) -> (i32, i32) {
    %c0_i32 = arith.constant 0 : i32
    %c0_i32_0 = arith.constant 0 : i32
    %c0_i32_1 = arith.constant 0 : i32
    return %c0_i32, %c0_i32_0 : i32, i32
  }
  func.func @transform_5(%arg0: i32) -> (i32, i32) {
    %c0_i32 = arith.constant 0 : i32
    %c0_i32_0 = arith.constant 0 : i32
    %c0_i32_1 = arith.constant 0 : i32
    return %c0_i32, %c0_i32_0 : i32, i32
  }
  func.func @transform_6(%arg0: i32) -> (i32, i32) {
    %c0_i32 = arith.constant 0 : i32
    %c0_i32_0 = arith.constant 0 : i32
    %c0_i32_1 = arith.constant 0 : i32
    return %c0_i32, %c0_i32_0 : i32, i32
  }
  func.func @transform_7(%arg0: i32) -> (i32, i32) {
    %c0_i32 = arith.constant 0 : i32
    %c0_i32_0 = arith.constant 0 : i32
    %c0_i32_1 = arith.constant 0 : i32
    return %c0_i32, %c0_i32_0 : i32, i32
  }
  func.func @transform_8(%arg0: i32) -> (i32, i32) {
    %c0_i32 = arith.constant 0 : i32
    %c0_i32_0 = arith.constant 0 : i32
    %c0_i32_1 = arith.constant 0 : i32
    return %c0_i32, %c0_i32_0 : i32, i32
  }
  func.func @transform_9(%arg0: i32) -> (i32, i32) {
    %c0_i32 = arith.constant 0 : i32
    %c0_i32_0 = arith.constant 0 : i32
    %c0_i32_1 = arith.constant 0 : i32
    return %c0_i32, %c0_i32_0 : i32, i32
  }
  func.func @transform_10(%arg0: i32) -> (i32, i32) {
    %c0_i32 = arith.constant 0 : i32
    %c0_i32_0 = arith.constant 0 : i32
    %c0_i32_1 = arith.constant 0 : i32
    return %c0_i32, %c0_i32_0 : i32, i32
  }
  func.func @transform_11(%arg0: i32) -> (i32, i32) {
    %c0_i32 = arith.constant 0 : i32
    %c0_i32_0 = arith.constant 0 : i32
    %c0_i32_1 = arith.constant 0 : i32
    return %c0_i32, %c0_i32_0 : i32, i32
  }
  func.func @transform_12(%arg0: i32) -> (i32, i32) {
    %c0_i32 = arith.constant 0 : i32
    %c0_i32_0 = arith.constant 0 : i32
    %c0_i32_1 = arith.constant 0 : i32
    return %c0_i32, %c0_i32_0 : i32, i32
  }
  func.func @transform_13(%arg0: i32) -> (i32, i32) {
    %c0_i32 = arith.constant 0 : i32
    %c0_i32_0 = arith.constant 0 : i32
    %c0_i32_1 = arith.constant 0 : i32
    return %c0_i32, %c0_i32_0 : i32, i32
  }
  func.func @transform_14(%arg0: i32) -> (i32, i32) {
    %c0_i32 = arith.constant 0 : i32
    %c0_i32_0 = arith.constant 0 : i32
    %c0_i32_1 = arith.constant 0 : i32
    return %c0_i32, %c0_i32_0 : i32, i32
  }
  func.func @transform_15(%arg0: i32) -> (i32, i32) {
    %c0_i32 = arith.constant 0 : i32
    %c0_i32_0 = arith.constant 0 : i32
    return %arg0, %c0_i32 : i32, i32
  }
}

</mosaic_0001>

<bundles_post_ra>
// kernel: tpu_custom_call.1
= control target key start
LH: loop header
LB: loop body
LE: loop exit
PB: predicated region body
PF: predicated region fallthrough
CT: control target
= control target key end

     0   :  { %s3534_s0 = inlined_call_operand.vmem [shape: f32[256,32], index: 0, kind: input, shape index: {}]   ;;  %s3535_s1 = inlined_call_operand.vmem [shape: f32[32,256], index: 1, kind: input, shape index: {}]   ;;  %s3536_s2 = inlined_call_operand.vmem [shape: f32[1,256], index: 2, kind: input, shape index: {}]   ;;  %s3537_s3 = inlined_call_operand.vmem [shape: f32[256,64], index: 3, kind: input, shape index: {}]   ;;  %s3538_s4 = inlined_call_operand.vmem [shape: f32[1,64], index: 4, kind: input, shape index: {}]   ;;  %s3539_s5 = inlined_call_operand.vmem [shape: f32[64,64], index: 5, kind: input, shape index: {}]   ;;  %s3540_s6 = inlined_call_operand.vmem [shape: f32[1,64], index: 6, kind: input, shape index: {}]   ;;  %s3541_s7 = inlined_call_operand.vmem [shape: f32[64,64], index: 7, kind: input, shape index: {}]   ;;  %s3542_s8 = inlined_call_operand.vmem [shape: f32[1,64], index: 8, kind: input, shape index: {}]   ;;  %s3543_s9 = inlined_call_operand.vmem [shape: f32[64,64], index: 9, kind: input, shape index: {}]   ;;  %s3544_s10 = inlined_call_operand.vmem [shape: f32[1,64], index: 10, kind: input, shape index: {}]   ;;  %s3545_s11 = inlined_call_operand.vmem [shape: f32[64,32], index: 11, kind: input, shape index: {}]   ;;  %s3546_s12 = inlined_call_operand.vmem [shape: f32[1,32], index: 12, kind: input, shape index: {}]   ;;  %s3547_s13 = inlined_call_operand.vmem [shape: f32[32,128], index: 13, kind: input, shape index: {}]   ;;  %s3548_s14 = inlined_call_operand.vmem [shape: f32[1,128], index: 14, kind: input, shape index: {}]   ;;  %s3549_s15 = inlined_call_operand.hbm [shape: f32[256,128], index: 15, kind: output, shape index: {}]  }
   0x1   :  { %3555 = sst [smem:[#allocation10_spill]] %s3535_s1 }
   0x2   :  { %20 = vsyncpa [#allocation3], 0 }
   0x3   :  { %22 = vsyncpa [#allocation3 + $0x1], 0  ;;  %s2976_s18 = smov 0   ;;  %s2978_s19 = smov 0  }
   0x4   :  { %s2980_s20 = smov 0   ;;  %s2982_s21 = smov 0  }
   0x5 LB: > { %3556 = sst [smem:[#allocation5_spill]] %s2878_s18  ;;  %s2997_s22 = sadd.s32 4294967295, %s2890_s21   ;;  %s2890_s21 = sphi %s2982_s21, %s3566_s21   ;;  %s2886_s20 = sphi %s2980_s20, %s3568_s20   ;;  %s2882_s19 = sphi %s2978_s19, %s3570_s19   ;;  %s2878_s18 = sphi %s2976_s18, %s3569_s18  }
   0x6   : > { %3557 = sst [smem:[#allocation6_spill]] %s2886_s20  ;;  %s2167_s23 = sadd.s32 4294967294, %s2890_s21  }
   0x7   : > { %s3001_s24 = sadd.s32 1, %s2890_s21   ;;  %s355_s25 = sadd.s32 1, %s2886_s20 }
   0x8   : > { %3558 = sst [smem:[#allocation7_spill]] %s3001_s24  ;;  %s352_s26 = ssub.s32 %s2890_s21, %s3001_s24 }
   0x9   : > { %p365_p0 = scmp.ne.s32.totalorder %s2886_s20, %s2882_s19  ;;  %p353_p1 = scmp.eq.s32.totalorder %s352_s26, 0 }
   0xa   : > { %p366_p2 = scmp.eq.s32.totalorder %s2997_s22, 1  ;;  %p371_p3 = scmp.ne.s32.totalorder %s2882_s19, %s2878_s18 }
   0xb   : > { %p372_p4 = scmp.eq.s32.totalorder %s2167_s23, 1  ;;  %p2170_p7 = scmp.ge.s32.totalorder %s2890_s21, 1 }
   0xc   : > { %s3012_s27 = scalar_select %p353_p1, %s2886_s20, %s355_s25  }
   0xd   : > { %p3014_p5 = por %p366_p2, %p365_p0  ;;  %p3018_p6 = por %p372_p4, %p371_p3 }
   0xe   : > { %3559 = sst [smem:[#allocation8_spill]] %s3012_s27  ;;  %p441_p8 = scmp.lt.s32.totalorder %s2890_s21, 3 }
   0xf   : > { %s3561_s29 = scalar_select %p3018_p6, 1, 0 }
  0x10   : > { %p442_p9 = pnand %p2170_p7, %p441_p8 }
  0x11   : > { %3562 = sst [smem:[#allocation9_spill]] %s3561_s29  ;;  %s3563_s1 = sld [smem:[#allocation10_spill]] (!%p442_p9)  ;;  %v2892_v7 = vmov (!%p442_p9), 0.0   ;;  %v790_v12 = vld [vmem:[%s3537_s3 + $0x80] sm:$0xff] (!%p442_p9)  ;;  %v791_v13 = vld [vmem:[%s3537_s3 + $0x88] sm:$0xff] (!%p442_p9)  ;;  %v792_v19 = vld [vmem:[%s3537_s3 + $0x90] sm:$0xff] (!%p442_p9) }
  0x12   : > { %445 = sbr.rel (%p442_p9) target bundleno = 1633 (0x661), region = 80  ;;  %s2172_s27 = sshll.u32 (!%p442_p9), %s2997_s22, 4  ;;  %645 = vmatprep.mubr.f32.mxu0 (!%p442_p9), %v2892_v7  ;;  %v774_v14 = vld [vmem:[%s3537_s3] sm:$0xff] (!%p442_p9)  ;;  %v775_v15 = vld [vmem:[%s3537_s3 + $0x8] sm:$0xff] (!%p442_p9)  ;;  %v2678_v17 = vpack.c.bf16 (!%p442_p9), %v791_v13, %v790_v12  ;;  %v793_v20 = vld [vmem:[%s3537_s3 + $0x98] sm:$0xff] (!%p442_p9)  ;;  %vm532_vm0 = vcmask (!%p442_p9), 261120  }
  0x13   : > { %p490_p10 = scmp.lt.s32.totalorder (!%p442_p9), %s2172_s27, 31  ;;  %v2680_v18 = vpack.c.bf16 (!%p442_p9), %v775_v15, %v774_v14  ;;  %v776_v21 = vld [vmem:[%s3537_s3 + $0x10] sm:$0xff] (!%p442_p9)  ;;  %v2682_v22 = vpack.c.bf16 (!%p442_p9), %v793_v20, %v792_v19  ;;  %v777_v23 = vld [vmem:[%s3537_s3 + $0x18] sm:$0xff] (!%p442_p9)  ;;  %v794_v24 = vld [vmem:[%s3537_s3 + $0xa0] sm:$0xff] (!%p442_p9)  ;;  %v522_v19 = vlaneseq (!%p442_p9)  ;;  %vm989_vm1 = vcmask (!%p442_p9), 523264   ;;  %s486_s29 = sand.u32 (!%p442_p9), 1, %s2882_s19  }
  0x14   : > { %v795_v25 = vld [vmem:[%s3537_s3 + $0xa8] sm:$0xff] (!%p442_p9)  ;;  %2679 = vmatprep.subr.bf16.mxu1 (!%p442_p9), %v2678_v17  ;;  %v2684_v26 = vpack.c.bf16 (!%p442_p9), %v777_v23, %v776_v21  ;;  %v778_v29 = vld [vmem:[%s3537_s3 + $0x20] sm:$0xff] (!%p442_p9)  ;;  %v796_v31 = vld [vmem:[%s3537_s3 + $0xb0] sm:$0xff] (!%p442_p9)  ;;  %s3493_s24 = scalar_lea.sflag (!%p442_p9), [#allocation3], %s486_s29  ;;  %s2893_s18 = smov (!%p442_p9), [#allocation2]  }
  0x15   : > { %2681 = vmatpush3.bf16.msra.mxu1 (!%p442_p9), %v2680_v18  ;;  %v2686_v28 = vpack.c.bf16 (!%p442_p9), %v795_v25, %v794_v24  ;;  %v779_v30 = vld [vmem:[%s3537_s3 + $0x28] sm:$0xff] (!%p442_p9)  ;;  %v797_v34 = vld [vmem:[%s3537_s3 + $0xb8] sm:$0xff] (!%p442_p9)  ;;  %v780_v35 = vld [vmem:[%s3537_s3 + $0x30] sm:$0xff] (!%p442_p9)  ;;  %v523_v20 = vshrl.u32 (!%p442_p9), %v522_v19, 7 }
  0x16   : > { %2683 = vmatprep.subr.bf16.mxu1 (!%p442_p9), %v2682_v22  ;;  %v2688_v32 = vpack.c.bf16 (!%p442_p9), %v779_v30, %v778_v29  ;;  %v2690_v36 = vpack.c.bf16 (!%p442_p9), %v797_v34, %v796_v31  ;;  %v781_v37 = vld [vmem:[%s3537_s3 + $0x38] sm:$0xff] (!%p442_p9)  ;;  %v798_v38 = vld [vmem:[%s3537_s3 + $0xc0] sm:$0xff] (!%p442_p9)  ;;  %v799_v39 = vld [vmem:[%s3537_s3 + $0xc8] sm:$0xff] (!%p442_p9) }
  0x17   : > { %v513_v0 = vld [vmem:[%s3563_s1 + $0x8] sm:$0xff] (!%p442_p9)  ;;  %v515_v1 = vld [vmem:[%s3563_s1 + $0x18] sm:$0xff] (!%p442_p9)  ;;  %v512_v2 = vld [vmem:[%s3563_s1] sm:$0xff] (!%p442_p9)  ;;  %v2692_v40 = vpack.c.bf16 (!%p442_p9), %v781_v37, %v780_v35  ;;  %v2694_v42 = vpack.c.bf16 (!%p442_p9), %v799_v39, %v798_v38  ;;  %v524_v21 = vsub.s32 (!%p442_p9), 0, %v523_v20  ;;  %v528_v23 = vsub.s32 (!%p442_p9), 1, %v523_v20 }
  0x18   : > { %v2670_v3 = vpack.c.bf16 (!%p442_p9), %v515_v1, %v513_v0  ;;  %v514_v4 = vld [vmem:[%s3563_s1 + $0x10] sm:$0xff] (!%p442_p9)  ;;  %v517_v5 = vld [vmem:[%s3563_s1 + $0x28] sm:$0xff] (!%p442_p9)  ;;  %v519_v6 = vld [vmem:[%s3563_s1 + $0x38] sm:$0xff] (!%p442_p9) }
  0x19   : > { %v2672_v8 = vpack.c.bf16 %v514_v4, %v512_v2  ;;  %v2674_v9 = vpack.c.bf16 %v519_v6, %v517_v5  ;;  %v516_v10 = vld [vmem:[%s3563_s1 + $0x20] sm:$0xff]  ;;  %v518_v11 = vld [vmem:[%s3563_s1 + $0x30] sm:$0xff]  ;;  %s3572_s27 = smov (!%p490_p10, %s2172_s27), 31  ;;  %2685 = vmatpush3.bf16.msra.mxu1 %v2684_v26  ;;  %v783_v44 = vld [vmem:[%s3537_s3 + $0x48] sm:$0xff]  ;;  %s2171_s1 = sshll.u32 %s486_s29, 7 }
  0x1a   : > { %2671 = vmatprep.subr.bf16.mxu0 %v2670_v3  ;;  %v2676_v16 = vpack.c.bf16 %v518_v11, %v516_v10  ;;  %s2173_s30 = sshll.u32 %s3572_s27, 3  ;;  %2687 = vmatprep.subr.bf16.mxu1 %v2686_v28  ;;  %v782_v43 = vld [vmem:[%s3537_s3 + $0x40] sm:$0xff]  ;;  %v800_v45 = vld [vmem:[%s3537_s3 + $0xd0] sm:$0xff]  ;;  %v801_v46 = vld [vmem:[%s3537_s3 + $0xd8] sm:$0xff]  ;;  %s3464_s16 = scalar_lea.vmem [#allocation2], %s2171_s1 }
  0x1b   : > { %2673 = vmatpush1.bf16.msra.mxu0 %v2672_v8  ;;  %s3083_s25 = scalar_lea.vmem %s3534_s0, %s2173_s30  ;;  %v2696_v47 = vpack.c.bf16 %v783_v44, %v782_v43  ;;  %v2698_v49 = vpack.c.bf16 %v801_v46, %v800_v45  ;;  %v784_v50 = vld [vmem:[%s3537_s3 + $0x50] sm:$0xff]  ;;  %v785_v51 = vld [vmem:[%s3537_s3 + $0x58] sm:$0xff]  ;;  %v802_v52 = vld [vmem:[%s3537_s3 + $0xe0] sm:$0xff]  ;;  %s2281_s30 = sshll.u32 %s2997_s22, 11 }
  0x1c   : > { %2675 = vmatprep.subr.bf16.mxu0 %v2674_v9  ;;  %v496_v27 = vld [vmem:[%s3083_s25] sm:$0xff]  ;;  %v497_v33 = vld [vmem:[%s3083_s25 + $0x8] sm:$0xff]  ;;  %v498_v41 = vld [vmem:[%s3083_s25 + $0x10] sm:$0xff]  ;;  %v2700_v54 = vpack.c.bf16 %v785_v51, %v784_v50  ;;  %s2105_s17 = sshll.u32 %s3464_s16, 4  ;;  %s3485_s20 = scalar_lea.hbm %s3549_s15, %s2281_s30  ;;  %s3487_s17 = int_to_ptr.vmem [resolvable:$true] %s2105_s17 }
  0x1d   : > { %2689 = vmatpush3.bf16.msra.mxu1 %v2688_v32  ;;  %v499_v48 = vld [vmem:[%s3083_s25 + $0x18] sm:$0xff]  ;;  %v803_v53 = vld [vmem:[%s3537_s3 + $0xe8] sm:$0xff]  ;;  %v500_v55 = vld [vmem:[%s3083_s25 + $0x20] sm:$0xff]  ;;  %s2828_s22 = scalar_lea.vmem %s3487_s17, 2048  ;;  %s2832_s1 = sshll.u32 %s2893_s18, 4  ;;  %s2833_s1 = int_to_ptr.vmem [resolvable:$false] %s2832_s1 }
  0x1e   : > { %2691 = vmatprep.subr.bf16.mxu1 %v2690_v36  ;;  %v2702_v56 = vpack.c.bf16 %v803_v53, %v802_v52  ;;  %v501_v57 = vld [vmem:[%s3083_s25 + $0x28] sm:$0xff]  ;;  %v502_v58 = vld [vmem:[%s3083_s25 + $0x30] sm:$0xff]  ;;  %v503_v59 = vld [vmem:[%s3083_s25 + $0x38] sm:$0xff]  ;;  %p2829_p11 = scmp.ne.s32.totalorder %s3487_s17, %s2828_s22  ;;  %s2834_s27 = scalar_lea.vmem %s2833_s1, 4096 }
  0x1f   : > { %2677 = vmatpush1.bf16.msra.mxu0 %v2676_v16  ;;  %v504_v60 = vld [vmem:[%s3083_s25 + $0x40] sm:$0xff]  ;;  %v505_v61 = vld [vmem:[%s3083_s25 + $0x48] sm:$0xff]  ;;  %v506_v62 = vld [vmem:[%s3083_s25 + $0x50] sm:$0xff]  ;;  %p2835_p0 = scmp.lt.s32.totalorder %s3487_s17, %s2833_s1  ;;  %p2836_p1 = scmp.lt.s32.totalorder %s2834_s27, %s2828_s22 }
  0x20   : > { %v507_v63 = vld [vmem:[%s3083_s25 + $0x58] sm:$0xff]  ;;  %v508_v0 = vld [vmem:[%s3083_s25 + $0x60] sm:$0xff]  ;;  %v509_v1 = vld [vmem:[%s3083_s25 + $0x68] sm:$0xff]  ;;  %p2830_p12 = pnand %p2829_p11, %p3014_p5 }
  0x21   : > { %2693 = vmatpush3.bf16.msra.mxu1 %v2692_v40  ;;  %v510_v2 = vld [vmem:[%s3083_s25 + $0x70] sm:$0xff]  ;;  %v511_v3 = vld [vmem:[%s3083_s25 + $0x78] sm:$0xff]  ;;  %v786_v4 = vld [vmem:[%s3537_s3 + $0x60] sm:$0xff]  ;;  %p2837_p2 = por %p2836_p1, %p2835_p0 }
  0x22   : > { %2174 = vmatmul.mubr.msk.f32.vlgmr.msra.gmra.mrb[0].mxu0 %vm532_vm0, %v496_v27  ;;  %2695 = vmatprep.subr.bf16.mxu1 %v2694_v42  ;;  %v787_v5 = vld [vmem:[%s3537_s3 + $0x68] sm:$0xff]  ;;  %v804_v8 = vld [vmem:[%s3537_s3 + $0xf0] sm:$0xff]  ;;  %v789_v11 = vld [vmem:[%s3537_s3 + $0x78] sm:$0xff]  ;;  %p2831_p13 = pneg %p2830_p12 }
  0x23   : > { %651 = vmatprep.mubr.f32.mxu0 %v2892_v7  ;;  %v2704_v6 = vpack.c.bf16 %v787_v5, %v786_v4  ;;  %v788_v10 = vld [vmem:[%s3537_s3 + $0x70] sm:$0xff]  ;;  %v974_v13 = vld [vmem:[%s3539_s5] sm:$0xff]  ;;  %v975_v14 = vld [vmem:[%s3539_s5 + $0x8] sm:$0xff] }
  0x24   : > { %v2708_v12 = vpack.c.bf16 %v789_v11, %v788_v10  ;;  %v976_v15 = vld [vmem:[%s3539_s5 + $0x10] sm:$0xff]  ;;  %v2710_v16 = vpack.c.bf16 %v975_v14, %v974_v13  ;;  %v977_v17 = vld [vmem:[%s3539_s5 + $0x18] sm:$0xff]  ;;  %v520_v22 = vld [vmem:[%s3536_s2] sm:$0x3]  ;;  %p2838_p3 = pnand %p2837_p2, %p2831_p13 }
  0x25   : > { %2697 = vmatpush3.bf16.msra.mxu1 %v2696_v47  ;;  %v2714_v18 = vpack.c.bf16 %v977_v17, %v976_v15  ;;  %v3213_v24 = vrot.slane %v520_v22, %v524_v21  ;;  %v3215_v25 = vrot.slane %v520_v22, %v528_v23 }
  0x26   : > { %2175 = vmatmul.mubr.msk.f32.gmra.mrb[2].mxu0 %vm532_vm0, %v497_v33  ;;  %2699 = vmatprep.subr.bf16.mxu1 %v2698_v49 }
  0x27   : > { %657 = vmatprep.mubr.f32.mxu0 %v2892_v7  ;;  %2711 = vmatprep.subr.bf16.mxu0 %v2710_v16 }
  0x28   : > { %2713 = vmatpush3.bf16.msra.mxu0 %v2710_v16 }
  0x29   : > { %2701 = vmatpush3.bf16.msra.mxu1 %v2700_v54  ;;  %2715 = vmatprep.subr.bf16.mxu0 %v2714_v18 }
  0x2a   : > { %2176 = vmatmul.mubr.msk.f32.gmra.mrb[4].mxu0 %vm532_vm0, %v498_v41  ;;  %2703 = vmatprep.subr.bf16.mxu1 %v2702_v56 }
  0x2b   : > { %663 = vmatprep.mubr.f32.mxu0 %v2892_v7 }
  0x2c   : > { %2717 = vmatpush3.bf16.msra.mxu0 %v2714_v18 }
  0x2d   : > { %2705 = vmatpush3.bf16.msra.mxu1 %v2704_v6 }
  0x2e   : > { %2177 = vmatmul.mubr.msk.f32.gmra.mrb[6].mxu0 %vm532_vm0, %v499_v48 }
  0x2f   : > { %669 = vmatprep.mubr.f32.mxu0 %v2892_v7 }
  0x32   : > { %2178 = vmatmul.mubr.msk.f32.gmra.mrb[8].mxu0 %vm532_vm0, %v500_v55 }
  0x33   : > { %675 = vmatprep.mubr.f32.mxu0 %v2892_v7 }
  0x36   : > { %2179 = vmatmul.mubr.msk.f32.gmra.mrb[10].mxu0 %vm532_vm0, %v501_v57 }
  0x37   : > { %681 = vmatprep.mubr.f32.mxu0 %v2892_v7 }
  0x3a   : > { %2180 = vmatmul.mubr.msk.f32.gmra.mrb[12].mxu0 %vm532_vm0, %v502_v58 }
  0x3b   : > { %687 = vmatprep.mubr.f32.mxu0 %v2892_v7 }
  0x3e   : > { %2181 = vmatmul.mubr.msk.f32.gmra.mrb[14].mxu0 %vm532_vm0, %v503_v59 }
  0x3f   : > { %693 = vmatprep.mubr.f32.mxu0 %v2892_v7 }
  0x42   : > { %2182 = vmatmul.mubr.msk.f32.gmra.mrb[16].mxu0 %vm532_vm0, %v504_v60 }
  0x43   : > { %699 = vmatprep.mubr.f32.mxu0 %v2892_v7 }
  0x46   : > { %2183 = vmatmul.mubr.msk.f32.gmra.mrb[18].mxu0 %vm532_vm0, %v505_v61 }
  0x47   : > { %705 = vmatprep.mubr.f32.mxu0 %v2892_v7 }
  0x4a   : > { %2184 = vmatmul.mubr.msk.f32.gmra.mrb[20].mxu0 %vm532_vm0, %v506_v62 }
  0x4b   : > { %711 = vmatprep.mubr.f32.mxu0 %v2892_v7 }
  0x4e   : > { %2185 = vmatmul.mubr.msk.f32.gmra.mrb[22].mxu0 %vm532_vm0, %v507_v63 }
  0x4f   : > { %717 = vmatprep.mubr.f32.mxu0 %v2892_v7 }
  0x52   : > { %2186 = vmatmul.mubr.msk.f32.gmra.mrb[24].mxu0 %vm532_vm0, %v508_v0 }
  0x53   : > { %723 = vmatprep.mubr.f32.mxu0 %v2892_v7 }
  0x56   : > { %2187 = vmatmul.mubr.msk.f32.gmra.mrb[26].mxu0 %vm532_vm0, %v509_v1 }
  0x57   : > { %729 = vmatprep.mubr.f32.mxu0 %v2892_v7 }
  0x5a   : > { %2188 = vmatmul.mubr.msk.f32.gmra.mrb[28].mxu0 %vm532_vm0, %v510_v2 }
  0x5b   : > { %735 = vmatprep.mubr.f32.mxu0 %v2892_v7  ;;  %v805_v7 = vld [vmem:[%s3537_s3 + $0xf8] sm:$0xff] }
  0x5c   : > { %v2706_v9 = vpack.c.bf16 %v805_v7, %v804_v8 }
  0x5e   : > { %2189 = vmatmul.mubr.msk.f32.gmra.mrb[30].mxu0 %vm532_vm0, %v511_v3  ;;  %2707 = vmatprep.subr.bf16.mxu1 %v2706_v9 }
  0x5f   : > { %2709 = vmatpush3.bf16.msra.mxu1 %v2708_v12 }
  0xf5   : > { %v647_v26 = vpop.f32.mrb[0].mxu0 }
  0xf6   : > { %v648_v27 = vadd.f32 %v647_v26, %v3213_v24  ;;  %v649_v28 = vpop.f32.mrb[1].mxu0 }
  0xf7   : > { %v650_v29 = vadd.f32 %v649_v28, %v3215_v25 }
  0xf8   : > { %v742_v32 = vmax.f32 %v648_v27, 0.0 }
  0xf9   : > { %v653_v30 = vpop.f32.mrb[2].mxu0  ;;  %v743_v31 = vmax.f32 %v650_v29, 0.0 }
  0xfa   : > { %v654_v33 = vadd.f32 %v653_v30, %v3213_v24  ;;  %v655_v34 = vpop.f32.mrb[3].mxu0 }
  0xfb   : > { %v656_v35 = vadd.f32 %v655_v34, %v3215_v25  ;;  %877 = vmatprep.mubr.f32.mxu1 %v743_v31 }
  0xfc   : > { %878 = vmatmul.mubr.f32.vlgmr.msra.gmra.mrb[0].mxu1 %v742_v32  ;;  %v744_v38 = vmax.f32 %v654_v33, 0.0 }
  0xfd   : > { %v745_v36 = vmax.f32 %v656_v35, 0.0  ;;  %v659_v37 = vpop.f32.mrb[4].mxu0 }
  0xfe   : > { %v660_v39 = vadd.f32 %v659_v37, %v3213_v24  ;;  %v661_v40 = vpop.f32.mrb[5].mxu0 }
  0xff   : > { %v662_v41 = vadd.f32 %v661_v40, %v3215_v25  ;;  %882 = vmatprep.mubr.f32.mxu1 %v745_v36 }
 0x100   : > { %883 = vmatmul.mubr.f32.gmra.mrb[2].mxu1 %v744_v38  ;;  %v746_v44 = vmax.f32 %v660_v39, 0.0 }
 0x101   : > { %v747_v42 = vmax.f32 %v662_v41, 0.0  ;;  %v665_v43 = vpop.f32.mrb[6].mxu0 }
 0x102   : > { %v666_v45 = vadd.f32 %v665_v43, %v3213_v24  ;;  %v667_v46 = vpop.f32.mrb[7].mxu0 }
 0x103   : > { %v668_v47 = vadd.f32 %v667_v46, %v3215_v25  ;;  %887 = vmatprep.mubr.f32.mxu1 %v747_v42 }
 0x104   : > { %888 = vmatmul.mubr.f32.gmra.mrb[4].mxu1 %v746_v44  ;;  %v748_v50 = vmax.f32 %v666_v45, 0.0 }
 0x105   : > { %v749_v48 = vmax.f32 %v668_v47, 0.0  ;;  %v671_v49 = vpop.f32.mrb[8].mxu0 }
 0x106   : > { %v672_v51 = vadd.f32 %v671_v49, %v3213_v24  ;;  %v673_v52 = vpop.f32.mrb[9].mxu0 }
 0x107   : > { %v674_v53 = vadd.f32 %v673_v52, %v3215_v25  ;;  %892 = vmatprep.mubr.f32.mxu1 %v749_v48 }
 0x108   : > { %893 = vmatmul.mubr.f32.gmra.mrb[6].mxu1 %v748_v50  ;;  %v750_v56 = vmax.f32 %v672_v51, 0.0 }
 0x109   : > { %v751_v54 = vmax.f32 %v674_v53, 0.0  ;;  %v677_v55 = vpop.f32.mrb[10].mxu0 }
 0x10a   : > { %v678_v57 = vadd.f32 %v677_v55, %v3213_v24  ;;  %v679_v58 = vpop.f32.mrb[11].mxu0 }
 0x10b   : > { %v680_v59 = vadd.f32 %v679_v58, %v3215_v25  ;;  %897 = vmatprep.mubr.f32.mxu1 %v751_v54 }
 0x10c   : > { %898 = vmatmul.mubr.f32.gmra.mrb[8].mxu1 %v750_v56  ;;  %v752_v62 = vmax.f32 %v678_v57, 0.0 }
 0x10d   : > { %v753_v60 = vmax.f32 %v680_v59, 0.0  ;;  %v683_v61 = vpop.f32.mrb[12].mxu0 }
 0x10e   : > { %v684_v63 = vadd.f32 %v683_v61, %v3213_v24  ;;  %v685_v0 = vpop.f32.mrb[13].mxu0  ;;  %v979_v61 = vld [vmem:[%s3539_s5 + $0x28] sm:$0xff] }
 0x10f   : > { %v686_v1 = vadd.f32 %v685_v0, %v3215_v25  ;;  %902 = vmatprep.mubr.f32.mxu1 %v753_v60  ;;  %v978_v60 = vld [vmem:[%s3539_s5 + $0x20] sm:$0xff] }
 0x110   : > { %903 = vmatmul.mubr.f32.gmra.mrb[10].mxu1 %v752_v62  ;;  %v754_v4 = vmax.f32 %v684_v63, 0.0  ;;  %v2718_v62 = vpack.c.bf16 %v979_v61, %v978_v60  ;;  %v1199_v0 = vld [vmem:[%s3541_s7] sm:$0xff] }
 0x111   : > { %v755_v2 = vmax.f32 %v686_v1, 0.0  ;;  %v689_v3 = vpop.f32.mrb[14].mxu0  ;;  %v1200_v1 = vld [vmem:[%s3541_s7 + $0x8] sm:$0xff] }
 0x112   : > { %v690_v5 = vadd.f32 %v689_v3, %v3213_v24  ;;  %v691_v6 = vpop.f32.mrb[15].mxu0  ;;  %2719 = vmatprep.subr.bf16.mxu0 %v2718_v62  ;;  %v2726_v3 = vpack.c.bf16 %v1200_v1, %v1199_v0 }
 0x113   : > { %v692_v8 = vadd.f32 %v691_v6, %v3215_v25  ;;  %907 = vmatprep.mubr.f32.mxu1 %v755_v2  ;;  %2721 = vmatpush3.bf16.msra.mxu0 %v2718_v62  ;;  %v1201_v2 = vld [vmem:[%s3541_s7 + $0x10] sm:$0xff]  ;;  %v1203_v6 = vld [vmem:[%s3541_s7 + $0x20] sm:$0xff] }
 0x114   : > { %908 = vmatmul.mubr.f32.gmra.mrb[12].mxu1 %v754_v4  ;;  %v756_v10 = vmax.f32 %v690_v5, 0.0  ;;  %v1202_v4 = vld [vmem:[%s3541_s7 + $0x18] sm:$0xff]  ;;  %2727 = vmatprep.subr.bf16.mxu1 %v2726_v3 }
 0x115   : > { %v757_v7 = vmax.f32 %v692_v8, 0.0  ;;  %v695_v9 = vpop.f32.mrb[16].mxu0  ;;  %v2730_v5 = vpack.c.bf16 %v1202_v4, %v1201_v2  ;;  %v1204_v8 = vld [vmem:[%s3541_s7 + $0x28] sm:$0xff]  ;;  %2729 = vmatpush3.bf16.msra.mxu1 %v2726_v3 }
 0x116   : > { %v696_v11 = vadd.f32 %v695_v9, %v3213_v24  ;;  %v697_v12 = vpop.f32.mrb[17].mxu0 }
 0x117   : > { %v698_v13 = vadd.f32 %v697_v12, %v3215_v25  ;;  %912 = vmatprep.mubr.f32.mxu1 %v757_v7  ;;  %2731 = vmatprep.subr.bf16.mxu1 %v2730_v5  ;;  %v2734_v7 = vpack.c.bf16 %v1204_v8, %v1203_v6 }
 0x118   : > { %913 = vmatmul.mubr.f32.gmra.mrb[14].mxu1 %v756_v10  ;;  %v758_v16 = vmax.f32 %v696_v11, 0.0  ;;  %v3282_v10 = vld [vmem:[%s3538_s4] ss:$0 sm:$0xff] }
 0x119   : > { %v759_v14 = vmax.f32 %v698_v13, 0.0  ;;  %v701_v15 = vpop.f32.mrb[18].mxu0  ;;  %2733 = vmatpush3.bf16.msra.mxu1 %v2730_v5 }
 0x11a   : > { %v702_v17 = vadd.f32 %v701_v15, %v3213_v24  ;;  %v703_v18 = vpop.f32.mrb[19].mxu0  ;;  %2735 = vmatprep.subr.bf16.mxu1 %v2734_v7 }
 0x11b   : > { %v704_v19 = vadd.f32 %v703_v18, %v3215_v25  ;;  %917 = vmatprep.mubr.f32.mxu1 %v759_v14 }
 0x11c   : > { %918 = vmatmul.mubr.f32.gmra.mrb[16].mxu1 %v758_v16  ;;  %v760_v22 = vmax.f32 %v702_v17, 0.0 }
 0x11d   : > { %v761_v20 = vmax.f32 %v704_v19, 0.0  ;;  %v707_v21 = vpop.f32.mrb[20].mxu0  ;;  %2737 = vmatpush3.bf16.msra.mxu1 %v2734_v7 }
 0x11e   : > { %v708_v23 = vadd.f32 %v707_v21, %v3213_v24  ;;  %v709_v26 = vpop.f32.mrb[21].mxu0 }
 0x11f   : > { %v710_v27 = vadd.f32 %v709_v26, %v3215_v25  ;;  %922 = vmatprep.mubr.f32.mxu1 %v761_v20 }
 0x120   : > { %923 = vmatmul.mubr.f32.gmra.mrb[18].mxu1 %v760_v22  ;;  %v762_v30 = vmax.f32 %v708_v23, 0.0 }
 0x121   : > { %v763_v28 = vmax.f32 %v710_v27, 0.0  ;;  %v713_v29 = vpop.f32.mrb[22].mxu0 }
 0x122   : > { %v714_v31 = vadd.f32 %v713_v29, %v3213_v24  ;;  %v715_v32 = vpop.f32.mrb[23].mxu0 }
 0x123   : > { %v716_v33 = vadd.f32 %v715_v32, %v3215_v25  ;;  %927 = vmatprep.mubr.f32.mxu1 %v763_v28 }
 0x124   : > { %928 = vmatmul.mubr.f32.gmra.mrb[20].mxu1 %v762_v30  ;;  %v764_v36 = vmax.f32 %v714_v31, 0.0 }
 0x125   : > { %v765_v34 = vmax.f32 %v716_v33, 0.0  ;;  %v719_v35 = vpop.f32.mrb[24].mxu0 }
 0x126   : > { %v720_v37 = vadd.f32 %v719_v35, %v3213_v24  ;;  %v721_v38 = vpop.f32.mrb[25].mxu0 }
 0x127   : > { %v722_v39 = vadd.f32 %v721_v38, %v3215_v25  ;;  %932 = vmatprep.mubr.f32.mxu1 %v765_v34 }
 0x128   : > { %933 = vmatmul.mubr.f32.gmra.mrb[22].mxu1 %v764_v36  ;;  %v766_v42 = vmax.f32 %v720_v37, 0.0 }
 0x129   : > { %v767_v40 = vmax.f32 %v722_v39, 0.0  ;;  %v725_v41 = vpop.f32.mrb[26].mxu0 }
 0x12a   : > { %v726_v43 = vadd.f32 %v725_v41, %v3213_v24  ;;  %v727_v44 = vpop.f32.mrb[27].mxu0 }
 0x12b   : > { %v728_v45 = vadd.f32 %v727_v44, %v3215_v25  ;;  %937 = vmatprep.mubr.f32.mxu1 %v767_v40 }
 0x12c   : > { %938 = vmatmul.mubr.f32.gmra.mrb[24].mxu1 %v766_v42  ;;  %v768_v48 = vmax.f32 %v726_v43, 0.0 }
 0x12d   : > { %v769_v46 = vmax.f32 %v728_v45, 0.0  ;;  %v731_v47 = vpop.f32.mrb[28].mxu0 }
 0x12e   : > { %v732_v49 = vadd.f32 %v731_v47, %v3213_v24  ;;  %v733_v50 = vpop.f32.mrb[29].mxu0 }
 0x12f   : > { %v734_v51 = vadd.f32 %v733_v50, %v3215_v25  ;;  %942 = vmatprep.mubr.f32.mxu1 %v769_v46 }
 0x130   : > { %943 = vmatmul.mubr.f32.gmra.mrb[26].mxu1 %v768_v48  ;;  %v770_v54 = vmax.f32 %v732_v49, 0.0 }
 0x131   : > { %v771_v52 = vmax.f32 %v734_v51, 0.0  ;;  %v737_v53 = vpop.f32.mrb[30].mxu0 }
 0x132   : > { %v738_v55 = vadd.f32 %v737_v53, %v3213_v24  ;;  %v739_v56 = vpop.f32.mrb[31].mxu0  ;;  %v980_v24 = vld [vmem:[%s3539_s5 + $0x30] sm:$0xff] }
 0x133   : > { %v740_v57 = vadd.f32 %v739_v56, %v3215_v25  ;;  %947 = vmatprep.mubr.f32.mxu1 %v771_v52  ;;  %v981_v25 = vld [vmem:[%s3539_s5 + $0x38] sm:$0xff] }
 0x134   : > { %948 = vmatmul.mubr.f32.gmra.mrb[28].mxu1 %v770_v54  ;;  %v772_v59 = vmax.f32 %v738_v55, 0.0  ;;  %v2722_v63 = vpack.c.bf16 %v981_v25, %v980_v24 }
 0x135   : > { %v773_v58 = vmax.f32 %v740_v57, 0.0 }
 0x136   : > { %2723 = vmatprep.subr.bf16.mxu0 %v2722_v63 }
 0x137   : > { %952 = vmatprep.mubr.f32.mxu1 %v773_v58  ;;  %2725 = vmatpush3.bf16.msra.mxu0 %v2722_v63 }
 0x138   : > { %953 = vmatmul.mubr.f32.gmra.mrb[30].mxu1 %v772_v59 }
 0x1cf   : > { %v2314_v9 = vpop.f32.mrb[0].mxu1 }
 0x1d0   : > { %v2315_v11 = vpop.f32.mrb[1].mxu1 }
 0x1d1   : > { %v2316_v12 = vadd.f32 %v2315_v11, %v2314_v9 }
 0x1d3   : > { %v880_v13 = vadd.f32 %v2316_v12, %v3282_v10  ;;  %v2317_v14 = vpop.f32.mrb[2].mxu1 }
 0x1d4   : > { %v2318_v15 = vpop.f32.mrb[3].mxu1 }
 0x1d5   : > { %v958_v16 = vmax.f32 %v880_v13, 0.0  ;;  %v2319_v17 = vadd.f32 %v2318_v15, %v2317_v14 }
 0x1d7   : > { %v885_v18 = vadd.f32 %v2319_v17, %v3282_v10  ;;  %v2320_v19 = vpop.f32.mrb[4].mxu1  ;;  %2494 = vmatprep.mubr.msk.f32.mxu0 %vm989_vm1, %v958_v16 }
 0x1d8   : > { %v2321_v20 = vpop.f32.mrb[5].mxu1 }
 0x1d9   : > { %v959_v21 = vmax.f32 %v885_v18, 0.0  ;;  %v2322_v22 = vadd.f32 %v2321_v20, %v2320_v19 }
 0x1db   : > { %v890_v23 = vadd.f32 %v2322_v22, %v3282_v10  ;;  %v2323_v26 = vpop.f32.mrb[6].mxu1  ;;  %2495 = vmatmul.mubr.msk.f32.vlgmr.msra.gmra.mrb[32].mxu0 %vm989_vm1, %v959_v21 }
 0x1dc   : > { %v2324_v27 = vpop.f32.mrb[7].mxu1 }
 0x1dd   : > { %v960_v28 = vmax.f32 %v890_v23, 0.0  ;;  %v2325_v29 = vadd.f32 %v2324_v27, %v2323_v26 }
 0x1df   : > { %v895_v30 = vadd.f32 %v2325_v29, %v3282_v10  ;;  %v2326_v31 = vpop.f32.mrb[8].mxu1  ;;  %2497 = vmatprep.mubr.msk.f32.mxu0 %vm989_vm1, %v960_v28  ;;  %v1205_v29 = vld [vmem:[%s3541_s7 + $0x30] sm:$0xff] }
 0x1e0   : > { %v2327_v32 = vpop.f32.mrb[9].mxu1 }
 0x1e1   : > { %v961_v33 = vmax.f32 %v895_v30, 0.0  ;;  %v2328_v34 = vadd.f32 %v2327_v32, %v2326_v31  ;;  %v1206_v30 = vld [vmem:[%s3541_s7 + $0x38] sm:$0xff]  ;;  %v1424_v32 = vld [vmem:[%s3543_s9 + $0x8] sm:$0xff] }
 0x1e2   : > { %v2738_v31 = vpack.c.bf16 %v1206_v30, %v1205_v29  ;;  %v1647_v29 = vld [vmem:[%s3545_s11] sm:$0xff]  ;;  %v1648_v30 = vld [vmem:[%s3545_s11 + $0x8] sm:$0xff] }
 0x1e3   : > { %v900_v35 = vadd.f32 %v2328_v34, %v3282_v10  ;;  %v2329_v36 = vpop.f32.mrb[10].mxu1  ;;  %2498 = vmatmul.mubr.msk.f32.gmra.mrb[34].mxu0 %vm989_vm1, %v961_v33  ;;  %v1425_v33 = vld [vmem:[%s3543_s9 + $0x10] sm:$0xff] }
 0x1e4   : > { %v2330_v37 = vpop.f32.mrb[11].mxu1  ;;  %2739 = vmatprep.subr.bf16.mxu1 %v2738_v31 }
 0x1e5   : > { %v962_v38 = vmax.f32 %v900_v35, 0.0  ;;  %v2331_v39 = vadd.f32 %v2330_v37, %v2329_v36  ;;  %2741 = vmatpush3.bf16.msra.mxu1 %v2738_v31  ;;  %v1426_v35 = vld [vmem:[%s3543_s9 + $0x18] sm:$0xff]  ;;  %v1427_v37 = vld [vmem:[%s3543_s9 + $0x20] sm:$0xff]  ;;  %v1649_v31 = vld [vmem:[%s3545_s11 + $0x10] sm:$0xff] }
 0x1e6   : > { %v2746_v36 = vpack.c.bf16 %v1426_v35, %v1425_v33  ;;  %v1652_v35 = vld [vmem:[%s3545_s11 + $0x28] sm:$0xff] }
 0x1e7   : > { %v905_v40 = vadd.f32 %v2331_v39, %v3282_v10  ;;  %v2332_v41 = vpop.f32.mrb[12].mxu1  ;;  %2500 = vmatprep.mubr.msk.f32.mxu0 %vm989_vm1, %v962_v38  ;;  %v1428_v38 = vld [vmem:[%s3543_s9 + $0x28] sm:$0xff] }
 0x1e8   : > { %v2333_v42 = vpop.f32.mrb[13].mxu1  ;;  %v2750_v39 = vpack.c.bf16 %v1428_v38, %v1427_v37  ;;  %v2208_v37 = vld [vmem:[%s3542_s8] ss:$0 sm:$0xff] }
 0x1e9   : > { %v963_v43 = vmax.f32 %v905_v40, 0.0  ;;  %v2334_v44 = vadd.f32 %v2333_v42, %v2332_v41  ;;  %v2191_v40 = vld [vmem:[%s3540_s6] ss:$0 sm:$0xff] }
 0x1eb   : > { %v910_v45 = vadd.f32 %v2334_v44, %v3282_v10  ;;  %v2335_v46 = vpop.f32.mrb[14].mxu1  ;;  %2501 = vmatmul.mubr.msk.f32.gmra.mrb[36].mxu0 %vm989_vm1, %v963_v43 }
 0x1ec   : > { %v2336_v47 = vpop.f32.mrb[15].mxu1 }
 0x1ed   : > { %v964_v48 = vmax.f32 %v910_v45, 0.0  ;;  %v2337_v49 = vadd.f32 %v2336_v47, %v2335_v46 }
 0x1ef   : > { %v915_v50 = vadd.f32 %v2337_v49, %v3282_v10  ;;  %v2338_v51 = vpop.f32.mrb[16].mxu1  ;;  %2503 = vmatprep.mubr.msk.f32.mxu0 %vm989_vm1, %v964_v48 }
 0x1f0   : > { %v2339_v52 = vpop.f32.mrb[17].mxu1 }
 0x1f1   : > { %v965_v53 = vmax.f32 %v915_v50, 0.0  ;;  %v2340_v54 = vadd.f32 %v2339_v52, %v2338_v51 }
 0x1f3   : > { %v920_v55 = vadd.f32 %v2340_v54, %v3282_v10  ;;  %v2341_v56 = vpop.f32.mrb[18].mxu1  ;;  %2504 = vmatmul.mubr.msk.f32.gmra.mrb[38].mxu0 %vm989_vm1, %v965_v53 }
 0x1f4   : > { %v2342_v57 = vpop.f32.mrb[19].mxu1 }
 0x1f5   : > { %v966_v58 = vmax.f32 %v920_v55, 0.0  ;;  %v2343_v59 = vadd.f32 %v2342_v57, %v2341_v56 }
 0x1f7   : > { %v925_v60 = vadd.f32 %v2343_v59, %v3282_v10  ;;  %v2344_v61 = vpop.f32.mrb[20].mxu1  ;;  %2506 = vmatprep.mubr.msk.f32.mxu0 %vm989_vm1, %v966_v58 }
 0x1f8   : > { %v2345_v62 = vpop.f32.mrb[21].mxu1 }
 0x1f9   : > { %v967_v24 = vmax.f32 %v925_v60, 0.0  ;;  %v2346_v25 = vadd.f32 %v2345_v62, %v2344_v61 }
 0x1fb   : > { %v930_v63 = vadd.f32 %v2346_v25, %v3282_v10  ;;  %v2347_v0 = vpop.f32.mrb[22].mxu1  ;;  %2507 = vmatmul.mubr.msk.f32.gmra.mrb[40].mxu0 %vm989_vm1, %v967_v24 }
 0x1fc   : > { %v2348_v1 = vpop.f32.mrb[23].mxu1 }
 0x1fd   : > { %v968_v2 = vmax.f32 %v930_v63, 0.0  ;;  %v2349_v3 = vadd.f32 %v2348_v1, %v2347_v0 }
 0x1ff   : > { %v935_v4 = vadd.f32 %v2349_v3, %v3282_v10  ;;  %v2350_v5 = vpop.f32.mrb[24].mxu1  ;;  %2509 = vmatprep.mubr.msk.f32.mxu0 %vm989_vm1, %v968_v2 }
 0x200   : > { %v2351_v6 = vpop.f32.mrb[25].mxu1 }
 0x201   : > { %v969_v8 = vmax.f32 %v935_v4, 0.0  ;;  %v2352_v7 = vadd.f32 %v2351_v6, %v2350_v5 }
 0x203   : > { %v940_v9 = vadd.f32 %v2352_v7, %v3282_v10  ;;  %v2353_v11 = vpop.f32.mrb[26].mxu1  ;;  %2510 = vmatmul.mubr.msk.f32.gmra.mrb[42].mxu0 %vm989_vm1, %v969_v8 }
 0x204   : > { %v2354_v12 = vpop.f32.mrb[27].mxu1 }
 0x205   : > { %v970_v13 = vmax.f32 %v940_v9, 0.0  ;;  %v2355_v14 = vadd.f32 %v2354_v12, %v2353_v11 }
 0x207   : > { %v945_v15 = vadd.f32 %v2355_v14, %v3282_v10  ;;  %v2356_v16 = vpop.f32.mrb[28].mxu1  ;;  %2512 = vmatprep.mubr.msk.f32.mxu0 %vm989_vm1, %v970_v13 }
 0x208   : > { %v2357_v17 = vpop.f32.mrb[29].mxu1 }
 0x209   : > { %v971_v18 = vmax.f32 %v945_v15, 0.0  ;;  %v2358_v19 = vadd.f32 %v2357_v17, %v2356_v16 }
 0x20b   : > { %v950_v20 = vadd.f32 %v2358_v19, %v3282_v10  ;;  %v2359_v21 = vpop.f32.mrb[30].mxu1  ;;  %2513 = vmatmul.mubr.msk.f32.gmra.mrb[44].mxu0 %vm989_vm1, %v971_v18 }
 0x20c   : > { %v2360_v22 = vpop.f32.mrb[31].mxu1 }
 0x20d   : > { %v972_v23 = vmax.f32 %v950_v20, 0.0  ;;  %v2361_v26 = vadd.f32 %v2360_v22, %v2359_v21 }
 0x20f   : > { %v955_v27 = vadd.f32 %v2361_v26, %v3282_v10  ;;  %2515 = vmatprep.mubr.msk.f32.mxu0 %vm989_vm1, %v972_v23  ;;  %v1423_v10 = vld [vmem:[%s3543_s9] sm:$0xff]  ;;  %v1429_v26 = vld [vmem:[%s3543_s9 + $0x30] sm:$0xff] }
 0x210   : > { %v2742_v34 = vpack.c.bf16 %v1424_v32, %v1423_v10  ;;  %v2758_v10 = vpack.c.bf16 %v1648_v30, %v1647_v29  ;;  %v1650_v32 = vld [vmem:[%s3545_s11 + $0x18] sm:$0xff]  ;;  %v2225_v29 = vld [vmem:[%s3544_s10] ss:$0 sm:$0xff] }
 0x211   : > { %v973_v28 = vmax.f32 %v955_v27, 0.0  ;;  %v1430_v27 = vld [vmem:[%s3543_s9 + $0x38] sm:$0xff]  ;;  %v2762_v33 = vpack.c.bf16 %v1650_v32, %v1649_v31 }
 0x212   : > { %2743 = vmatprep.subr.bf16.mxu0 %v2742_v34  ;;  %2759 = vmatprep.subr.bf16.mxu1 %v2758_v10 }
 0x213   : > { %2516 = vmatmul.mubr.msk.f32.gmra.mrb[46].mxu0 %vm989_vm1, %v973_v28  ;;  %v2754_v28 = vpack.c.bf16 %v1430_v27, %v1429_v26  ;;  %v1871_v26 = vld [vmem:[%s3547_s13] sm:$0xff]  ;;  %v1872_v27 = vld [vmem:[%s3547_s13 + $0x8] sm:$0xff] }
 0x214   : > { %2745 = vmatpush3.bf16.msra.mxu0 %v2742_v34  ;;  %v1651_v34 = vld [vmem:[%s3545_s11 + $0x20] sm:$0xff] }
 0x215   : > { %2747 = vmatprep.subr.bf16.mxu0 %v2746_v36 }
 0x218   : > { %2749 = vmatpush3.bf16.msra.mxu0 %v2746_v36  ;;  %v2766_v36 = vpack.c.bf16 %v1652_v35, %v1651_v34 }
 0x219   : > { %2751 = vmatprep.subr.bf16.mxu0 %v2750_v39 }
 0x21c   : > { %2753 = vmatpush3.bf16.msra.mxu0 %v2750_v39 }
 0x21d   : > { %2755 = vmatprep.subr.bf16.mxu0 %v2754_v28 }
 0x220   : > { %2757 = vmatpush3.bf16.msra.mxu0 %v2754_v28  ;;  %v2774_v28 = vpack.c.bf16 %v1872_v27, %v1871_v26 }
 0x222   : > { %2775 = vmatprep.subr.bf16.mxu0 %v2774_v28 }
 0x2ae   : > { %v2496_v41 = vpop.f32.mrb[32].mxu0 }
 0x2af   : > { %v1110_v42 = vadd.f32 %v2496_v41, %v2191_v40  ;;  %v1104_v43 = vpop.f32.mrb[33].mxu0 }
 0x2b0   : > { %v1105_v44 = vadd.f32 %v2191_v40, %v1104_v43 }
 0x2b1   : > { %v1184_v46 = vmax.f32 %v1110_v42, 0.0 }
 0x2b2   : > { %v1183_v45 = vmax.f32 %v1105_v44, 0.0 }
 0x2b4   : > { %2534 = vmatprep.mubr.msk.f32.mxu1 %vm989_vm1, %v1183_v45 }
 0x2b5   : > { %2535 = vmatmul.mubr.msk.f32.vlgmr.msra.gmra.mrb[32].mxu1 %vm989_vm1, %v1184_v46 }
 0x2b6   : > { %v2499_v47 = vpop.f32.mrb[34].mxu0  ;;  %2761 = vmatpush3.bf16.msra.mxu1 %v2758_v10 }
 0x2b7   : > { %v1120_v48 = vadd.f32 %v2499_v47, %v2191_v40  ;;  %v1114_v49 = vpop.f32.mrb[35].mxu0  ;;  %2763 = vmatprep.subr.bf16.mxu1 %v2762_v33 }
 0x2b8   : > { %v1115_v50 = vadd.f32 %v2191_v40, %v1114_v49 }
 0x2b9   : > { %v1186_v52 = vmax.f32 %v1120_v48, 0.0 }
 0x2ba   : > { %v1185_v51 = vmax.f32 %v1115_v50, 0.0  ;;  %2765 = vmatpush3.bf16.msra.mxu1 %v2762_v33 }
 0x2bb   : > { %2767 = vmatprep.subr.bf16.mxu1 %v2766_v36 }
 0x2bc   : > { %2537 = vmatprep.mubr.msk.f32.mxu1 %vm989_vm1, %v1185_v51 }
 0x2bd   : > { %2538 = vmatmul.mubr.msk.f32.gmra.mrb[34].mxu1 %vm989_vm1, %v1186_v52 }
 0x2be   : > { %v2502_v53 = vpop.f32.mrb[36].mxu0  ;;  %2769 = vmatpush3.bf16.msra.mxu1 %v2766_v36 }
 0x2bf   : > { %v1130_v54 = vadd.f32 %v2502_v53, %v2191_v40  ;;  %v1124_v55 = vpop.f32.mrb[37].mxu0 }
 0x2c0   : > { %v1125_v56 = vadd.f32 %v2191_v40, %v1124_v55 }
 0x2c1   : > { %v1188_v58 = vmax.f32 %v1130_v54, 0.0 }
 0x2c2   : > { %v1187_v57 = vmax.f32 %v1125_v56, 0.0 }
 0x2c4   : > { %2540 = vmatprep.mubr.msk.f32.mxu1 %vm989_vm1, %v1187_v57 }
 0x2c5   : > { %2541 = vmatmul.mubr.msk.f32.gmra.mrb[36].mxu1 %vm989_vm1, %v1188_v58 }
 0x2c6   : > { %v2505_v59 = vpop.f32.mrb[38].mxu0 }
 0x2c7   : > { %v1140_v60 = vadd.f32 %v2505_v59, %v2191_v40  ;;  %v1134_v61 = vpop.f32.mrb[39].mxu0 }
 0x2c8   : > { %v1135_v62 = vadd.f32 %v2191_v40, %v1134_v61 }
 0x2c9   : > { %v1190_v25 = vmax.f32 %v1140_v60, 0.0 }
 0x2ca   : > { %v1189_v24 = vmax.f32 %v1135_v62, 0.0 }
 0x2cc   : > { %2543 = vmatprep.mubr.msk.f32.mxu1 %vm989_vm1, %v1189_v24 }
 0x2cd   : > { %2544 = vmatmul.mubr.msk.f32.gmra.mrb[38].mxu1 %vm989_vm1, %v1190_v25 }
 0x2ce   : > { %v2508_v63 = vpop.f32.mrb[40].mxu0 }
 0x2cf   : > { %v1150_v0 = vadd.f32 %v2508_v63, %v2191_v40  ;;  %v1144_v1 = vpop.f32.mrb[41].mxu0 }
 0x2d0   : > { %v1145_v2 = vadd.f32 %v2191_v40, %v1144_v1 }
 0x2d1   : > { %v1192_v4 = vmax.f32 %v1150_v0, 0.0 }
 0x2d2   : > { %v1191_v3 = vmax.f32 %v1145_v2, 0.0 }
 0x2d4   : > { %2546 = vmatprep.mubr.msk.f32.mxu1 %vm989_vm1, %v1191_v3 }
 0x2d5   : > { %2547 = vmatmul.mubr.msk.f32.gmra.mrb[40].mxu1 %vm989_vm1, %v1192_v4 }
 0x2d6   : > { %v2511_v5 = vpop.f32.mrb[42].mxu0 }
 0x2d7   : > { %v1160_v6 = vadd.f32 %v2511_v5, %v2191_v40  ;;  %v1154_v8 = vpop.f32.mrb[43].mxu0 }
 0x2d8   : > { %v1155_v7 = vadd.f32 %v2191_v40, %v1154_v8 }
 0x2d9   : > { %v1194_v11 = vmax.f32 %v1160_v6, 0.0 }
 0x2da   : > { %v1193_v9 = vmax.f32 %v1155_v7, 0.0 }
 0x2dc   : > { %2549 = vmatprep.mubr.msk.f32.mxu1 %vm989_vm1, %v1193_v9 }
 0x2dd   : > { %2550 = vmatmul.mubr.msk.f32.gmra.mrb[42].mxu1 %vm989_vm1, %v1194_v11 }
 0x2de   : > { %v2514_v12 = vpop.f32.mrb[44].mxu0 }
 0x2df   : > { %v1170_v13 = vadd.f32 %v2514_v12, %v2191_v40  ;;  %v1164_v14 = vpop.f32.mrb[45].mxu0 }
 0x2e0   : > { %v1165_v15 = vadd.f32 %v2191_v40, %v1164_v14 }
 0x2e1   : > { %v1196_v17 = vmax.f32 %v1170_v13, 0.0 }
 0x2e2   : > { %v1195_v16 = vmax.f32 %v1165_v15, 0.0 }
 0x2e4   : > { %2552 = vmatprep.mubr.msk.f32.mxu1 %vm989_vm1, %v1195_v16 }
 0x2e5   : > { %2553 = vmatmul.mubr.msk.f32.gmra.mrb[44].mxu1 %vm989_vm1, %v1196_v17 }
 0x2e6   : > { %v2517_v18 = vpop.f32.mrb[46].mxu0 }
 0x2e7   : > { %v1180_v19 = vadd.f32 %v2517_v18, %v2191_v40  ;;  %v1174_v20 = vpop.f32.mrb[47].mxu0 }
 0x2e8   : > { %v1175_v21 = vadd.f32 %v2191_v40, %v1174_v20 }
 0x2e9   : > { %v1198_v23 = vmax.f32 %v1180_v19, 0.0 }
 0x2ea   : > { %v1197_v22 = vmax.f32 %v1175_v21, 0.0  ;;  %v1653_v21 = vld [vmem:[%s3545_s11 + $0x30] sm:$0xff] }
 0x2ec   : > { %2555 = vmatprep.mubr.msk.f32.mxu1 %vm989_vm1, %v1197_v22  ;;  %v1654_v22 = vld [vmem:[%s3545_s11 + $0x38] sm:$0xff] }
 0x2ed   : > { %2556 = vmatmul.mubr.msk.f32.gmra.mrb[46].mxu1 %vm989_vm1, %v1198_v23  ;;  %v2770_v23 = vpack.c.bf16 %v1654_v22, %v1653_v21 }
 0x2ef   : > { %2771 = vmatprep.subr.bf16.mxu1 %v2770_v23 }
 0x2f0   : > { %2773 = vmatpush3.bf16.msra.mxu1 %v2770_v23 }
 0x2f1   : > { %2782 = vmatprep.subr.bf16.mxu1 %v2774_v28 }
 0x388   : > { %v2536_v38 = vpop.f32.mrb[32].mxu1 }
 0x389   : > { %v1334_v39 = vadd.f32 %v2536_v38, %v2208_v37  ;;  %v1328_v40 = vpop.f32.mrb[33].mxu1 }
 0x38a   : > { %v1329_v41 = vadd.f32 %v2208_v37, %v1328_v40 }
 0x38b   : > { %v1408_v43 = vmax.f32 %v1334_v39, 0.0 }
 0x38c   : > { %v1407_v42 = vmax.f32 %v1329_v41, 0.0 }
 0x38e   : > { %2574 = vmatprep.mubr.msk.f32.mxu0 %vm989_vm1, %v1407_v42 }
 0x38f   : > { %2575 = vmatmul.mubr.msk.f32.vlgmr.msra.gmra.mrb[48].mxu0 %vm989_vm1, %v1408_v43 }
 0x390   : > { %v2539_v44 = vpop.f32.mrb[34].mxu1  ;;  %2777 = vmatpush3.bf16.msra.mxu0 %v2774_v28 }
 0x391   : > { %v1344_v45 = vadd.f32 %v2539_v44, %v2208_v37  ;;  %v1338_v46 = vpop.f32.mrb[35].mxu1 }
 0x392   : > { %v1339_v47 = vadd.f32 %v2208_v37, %v1338_v46 }
 0x393   : > { %v1410_v49 = vmax.f32 %v1344_v45, 0.0 }
 0x394   : > { %v1409_v48 = vmax.f32 %v1339_v47, 0.0 }
 0x396   : > { %2577 = vmatprep.mubr.msk.f32.mxu0 %vm989_vm1, %v1409_v48 }
 0x397   : > { %2578 = vmatmul.mubr.msk.f32.gmra.mrb[50].mxu0 %vm989_vm1, %v1410_v49 }
 0x398   : > { %v2542_v50 = vpop.f32.mrb[36].mxu1 }
 0x399   : > { %v1354_v51 = vadd.f32 %v2542_v50, %v2208_v37  ;;  %v1348_v52 = vpop.f32.mrb[37].mxu1 }
 0x39a   : > { %v1349_v53 = vadd.f32 %v2208_v37, %v1348_v52 }
 0x39b   : > { %v1412_v55 = vmax.f32 %v1354_v51, 0.0 }
 0x39c   : > { %v1411_v54 = vmax.f32 %v1349_v53, 0.0 }
 0x39e   : > { %2580 = vmatprep.mubr.msk.f32.mxu0 %vm989_vm1, %v1411_v54 }
 0x39f   : > { %2581 = vmatmul.mubr.msk.f32.gmra.mrb[52].mxu0 %vm989_vm1, %v1412_v55 }
 0x3a0   : > { %v2545_v56 = vpop.f32.mrb[38].mxu1 }
 0x3a1   : > { %v1364_v57 = vadd.f32 %v2545_v56, %v2208_v37  ;;  %v1358_v58 = vpop.f32.mrb[39].mxu1 }
 0x3a2   : > { %v1359_v59 = vadd.f32 %v2208_v37, %v1358_v58 }
 0x3a3   : > { %v1414_v61 = vmax.f32 %v1364_v57, 0.0 }
 0x3a4   : > { %v1413_v60 = vmax.f32 %v1359_v59, 0.0 }
 0x3a6   : > { %2583 = vmatprep.mubr.msk.f32.mxu0 %vm989_vm1, %v1413_v60 }
 0x3a7   : > { %2584 = vmatmul.mubr.msk.f32.gmra.mrb[54].mxu0 %vm989_vm1, %v1414_v61 }
 0x3a8   : > { %v2548_v62 = vpop.f32.mrb[40].mxu1 }
 0x3a9   : > { %v1374_v24 = vadd.f32 %v2548_v62, %v2208_v37  ;;  %v1368_v25 = vpop.f32.mrb[41].mxu1 }
 0x3aa   : > { %v1369_v63 = vadd.f32 %v2208_v37, %v1368_v25 }
 0x3ab   : > { %v1416_v1 = vmax.f32 %v1374_v24, 0.0 }
 0x3ac   : > { %v1415_v0 = vmax.f32 %v1369_v63, 0.0 }
 0x3ae   : > { %2586 = vmatprep.mubr.msk.f32.mxu0 %vm989_vm1, %v1415_v0 }
 0x3af   : > { %2587 = vmatmul.mubr.msk.f32.gmra.mrb[56].mxu0 %vm989_vm1, %v1416_v1 }
 0x3b0   : > { %v2551_v2 = vpop.f32.mrb[42].mxu1 }
 0x3b1   : > { %v1384_v3 = vadd.f32 %v2551_v2, %v2208_v37  ;;  %v1378_v4 = vpop.f32.mrb[43].mxu1 }
 0x3b2   : > { %v1379_v5 = vadd.f32 %v2208_v37, %v1378_v4 }
 0x3b3   : > { %v1418_v8 = vmax.f32 %v1384_v3, 0.0 }
 0x3b4   : > { %v1417_v6 = vmax.f32 %v1379_v5, 0.0 }
 0x3b6   : > { %2589 = vmatprep.mubr.msk.f32.mxu0 %vm989_vm1, %v1417_v6 }
 0x3b7   : > { %2590 = vmatmul.mubr.msk.f32.gmra.mrb[58].mxu0 %vm989_vm1, %v1418_v8 }
 0x3b8   : > { %v2554_v7 = vpop.f32.mrb[44].mxu1 }
 0x3b9   : > { %v1394_v9 = vadd.f32 %v2554_v7, %v2208_v37  ;;  %v1388_v11 = vpop.f32.mrb[45].mxu1 }
 0x3ba   : > { %v1389_v12 = vadd.f32 %v2208_v37, %v1388_v11 }
 0x3bb   : > { %v1420_v14 = vmax.f32 %v1394_v9, 0.0 }
 0x3bc   : > { %v1419_v13 = vmax.f32 %v1389_v12, 0.0  ;;  %v1873_v12 = vld [vmem:[%s3547_s13 + $0x10] sm:$0xff] }
 0x3be   : > { %2592 = vmatprep.mubr.msk.f32.mxu0 %vm989_vm1, %v1419_v13  ;;  %v1874_v13 = vld [vmem:[%s3547_s13 + $0x18] sm:$0xff] }
 0x3bf   : > { %2593 = vmatmul.mubr.msk.f32.gmra.mrb[60].mxu0 %vm989_vm1, %v1420_v14  ;;  %v2778_v14 = vpack.c.bf16 %v1874_v13, %v1873_v12 }
 0x3c0   : > { %v2557_v15 = vpop.f32.mrb[46].mxu1 }
 0x3c1   : > { %v1404_v16 = vadd.f32 %v2557_v15, %v2208_v37  ;;  %v1398_v17 = vpop.f32.mrb[47].mxu1  ;;  %2779 = vmatprep.subr.bf16.mxu0 %v2778_v14  ;;  %v2242_v15 = vld [vmem:[%s3546_s12] ss:$0 sm:$0xff] }
 0x3c2   : > { %v1399_v18 = vadd.f32 %v2208_v37, %v1398_v17  ;;  %2781 = vmatpush3.bf16.msra.mxu0 %v2778_v14 }
 0x3c3   : > { %v1422_v20 = vmax.f32 %v1404_v16, 0.0 }
 0x3c4   : > { %v1421_v19 = vmax.f32 %v1399_v18, 0.0 }
 0x3c6   : > { %2595 = vmatprep.mubr.msk.f32.mxu0 %vm989_vm1, %v1421_v19 }
 0x3c7   : > { %2596 = vmatmul.mubr.msk.f32.gmra.mrb[62].mxu0 %vm989_vm1, %v1422_v20 }
 0x462   : > { %v2576_v30 = vpop.f32.mrb[48].mxu0 }
 0x463   : > { %v1558_v31 = vadd.f32 %v2576_v30, %v2225_v29  ;;  %v1552_v10 = vpop.f32.mrb[49].mxu0 }
 0x464   : > { %v1553_v32 = vadd.f32 %v2225_v29, %v1552_v10 }
 0x465   : > { %v1632_v34 = vmax.f32 %v1558_v31, 0.0 }
 0x466   : > { %v1631_v33 = vmax.f32 %v1553_v32, 0.0 }
 0x468   : > { %2614 = vmatprep.mubr.msk.f32.mxu1 %vm989_vm1, %v1631_v33 }
 0x469   : > { %2615 = vmatmul.mubr.msk.f32.vlgmr.msra.gmra.mrb[48].mxu1 %vm989_vm1, %v1632_v34 }
 0x46a   : > { %v2579_v35 = vpop.f32.mrb[50].mxu0  ;;  %2784 = vmatpush3.bf16.msra.mxu1 %v2774_v28 }
 0x46b   : > { %v1568_v36 = vadd.f32 %v2579_v35, %v2225_v29  ;;  %v1562_v37 = vpop.f32.mrb[51].mxu0  ;;  %2783 = vmatprep.subr.bf16.mxu1 %v2778_v14 }
 0x46c   : > { %v1563_v38 = vadd.f32 %v2225_v29, %v1562_v37 }
 0x46d   : > { %v1634_v40 = vmax.f32 %v1568_v36, 0.0 }
 0x46e   : > { %v1633_v39 = vmax.f32 %v1563_v38, 0.0  ;;  %2785 = vmatpush3.bf16.msra.mxu1 %v2778_v14 }
 0x470   : > { %2617 = vmatprep.mubr.msk.f32.mxu1 %vm989_vm1, %v1633_v39 }
 0x471   : > { %2618 = vmatmul.mubr.msk.f32.gmra.mrb[50].mxu1 %vm989_vm1, %v1634_v40 }
 0x472   : > { %v2582_v41 = vpop.f32.mrb[52].mxu0 }
 0x473   : > { %v1578_v42 = vadd.f32 %v2582_v41, %v2225_v29  ;;  %v1572_v43 = vpop.f32.mrb[53].mxu0 }
 0x474   : > { %v1573_v44 = vadd.f32 %v2225_v29, %v1572_v43 }
 0x475   : > { %v1636_v46 = vmax.f32 %v1578_v42, 0.0 }
 0x476   : > { %v1635_v45 = vmax.f32 %v1573_v44, 0.0 }
 0x478   : > { %2620 = vmatprep.mubr.msk.f32.mxu1 %vm989_vm1, %v1635_v45 }
 0x479   : > { %2621 = vmatmul.mubr.msk.f32.gmra.mrb[52].mxu1 %vm989_vm1, %v1636_v46 }
 0x47a   : > { %v2585_v47 = vpop.f32.mrb[54].mxu0 }
 0x47b   : > { %v1588_v48 = vadd.f32 %v2585_v47, %v2225_v29  ;;  %v1582_v49 = vpop.f32.mrb[55].mxu0 }
 0x47c   : > { %v1583_v50 = vadd.f32 %v2225_v29, %v1582_v49 }
 0x47d   : > { %v1638_v52 = vmax.f32 %v1588_v48, 0.0 }
 0x47e   : > { %v1637_v51 = vmax.f32 %v1583_v50, 0.0 }
 0x480   : > { %2623 = vmatprep.mubr.msk.f32.mxu1 %vm989_vm1, %v1637_v51 }
 0x481   : > { %2624 = vmatmul.mubr.msk.f32.gmra.mrb[54].mxu1 %vm989_vm1, %v1638_v52 }
 0x482   : > { %v2588_v53 = vpop.f32.mrb[56].mxu0 }
 0x483   : > { %v1598_v54 = vadd.f32 %v2588_v53, %v2225_v29  ;;  %v1592_v55 = vpop.f32.mrb[57].mxu0 }
 0x484   : > { %v1593_v56 = vadd.f32 %v2225_v29, %v1592_v55 }
 0x485   : > { %v1640_v58 = vmax.f32 %v1598_v54, 0.0 }
 0x486   : > { %v1639_v57 = vmax.f32 %v1593_v56, 0.0 }
 0x488   : > { %2626 = vmatprep.mubr.msk.f32.mxu1 %vm989_vm1, %v1639_v57 }
 0x489   : > { %2627 = vmatmul.mubr.msk.f32.gmra.mrb[56].mxu1 %vm989_vm1, %v1640_v58 }
 0x48a   : > { %v2591_v59 = vpop.f32.mrb[58].mxu0 }
 0x48b   : > { %v1608_v60 = vadd.f32 %v2591_v59, %v2225_v29  ;;  %v1602_v61 = vpop.f32.mrb[59].mxu0 }
 0x48c   : > { %v1603_v62 = vadd.f32 %v2225_v29, %v1602_v61 }
 0x48d   : > { %v1642_v25 = vmax.f32 %v1608_v60, 0.0 }
 0x48e   : > { %v1641_v24 = vmax.f32 %v1603_v62, 0.0 }
 0x490   : > { %2629 = vmatprep.mubr.msk.f32.mxu1 %vm989_vm1, %v1641_v24 }
 0x491   : > { %2630 = vmatmul.mubr.msk.f32.gmra.mrb[58].mxu1 %vm989_vm1, %v1642_v25 }
 0x492   : > { %v2594_v63 = vpop.f32.mrb[60].mxu0 }
 0x493   : > { %v1618_v0 = vadd.f32 %v2594_v63, %v2225_v29  ;;  %v1612_v1 = vpop.f32.mrb[61].mxu0  ;;  %v2259_v63 = vld [vmem:[%s3548_s14] ss:$0 sm:$0xff] }
 0x494   : > { %v1613_v2 = vadd.f32 %v2225_v29, %v1612_v1 }
 0x495   : > { %v1644_v4 = vmax.f32 %v1618_v0, 0.0 }
 0x496   : > { %v1643_v3 = vmax.f32 %v1613_v2, 0.0 }
 0x498   : > { %2632 = vmatprep.mubr.msk.f32.mxu1 %vm989_vm1, %v1643_v3 }
 0x499   : > { %2633 = vmatmul.mubr.msk.f32.gmra.mrb[60].mxu1 %vm989_vm1, %v1644_v4 }
 0x49a   : > { %v2597_v5 = vpop.f32.mrb[62].mxu0 }
 0x49b   : > { %v1628_v6 = vadd.f32 %v2597_v5, %v2225_v29  ;;  %v1622_v8 = vpop.f32.mrb[63].mxu0 }
 0x49c   : > { %v1623_v7 = vadd.f32 %v2225_v29, %v1622_v8 }
 0x49d   : > { %v1646_v11 = vmax.f32 %v1628_v6, 0.0 }
 0x49e   : > { %v1645_v9 = vmax.f32 %v1623_v7, 0.0 }
 0x4a0   : > { %2635 = vmatprep.mubr.msk.f32.mxu1 %vm989_vm1, %v1645_v9 }
 0x4a1   : > { %2636 = vmatmul.mubr.msk.f32.gmra.mrb[62].mxu1 %vm989_vm1, %v1646_v11 }
 0x53c   : > { %v2616_v16 = vpop.f32.mrb[48].mxu1 }
 0x53d   : > { %v1782_v17 = vadd.f32 %v2616_v16, %v2242_v15  ;;  %v1776_v18 = vpop.f32.mrb[49].mxu1 }
 0x53e   : > { %v1777_v19 = vadd.f32 %v2242_v15, %v1776_v18 }
 0x53f   : > { %v1856_v21 = vmax.f32 %v1782_v17, 0.0 }
 0x540   : > { %v1855_v20 = vmax.f32 %v1777_v19, 0.0 }
 0x542   : > { %2646 = vmatprep.mubr.msk.f32.mxu0 %vm532_vm0, %v1855_v20 }
 0x543   : > { %2647 = vmatmul.mubr.msk.f32.vlgmr.msra.gmra.mrb[64].mxu0 %vm532_vm0, %v1856_v21 }
 0x544   : > { %v2619_v22 = vpop.f32.mrb[50].mxu1 }
 0x545   : > { %v1792_v23 = vadd.f32 %v2619_v22, %v2242_v15  ;;  %v1786_v26 = vpop.f32.mrb[51].mxu1 }
 0x546   : > { %v1787_v27 = vadd.f32 %v2242_v15, %v1786_v26 }
 0x547   : > { %v1858_v29 = vmax.f32 %v1792_v23, 0.0 }
 0x548   : > { %v1857_v28 = vmax.f32 %v1787_v27, 0.0 }
 0x54a   : > { %2649 = vmatprep.mubr.msk.f32.mxu0 %vm532_vm0, %v1857_v28 }
 0x54b   : > { %2650 = vmatmul.mubr.msk.f32.gmra.mrb[66].mxu0 %vm532_vm0, %v1858_v29 }
 0x54c   : > { %v2622_v30 = vpop.f32.mrb[52].mxu1 }
 0x54d   : > { %v1802_v31 = vadd.f32 %v2622_v30, %v2242_v15  ;;  %v1796_v10 = vpop.f32.mrb[53].mxu1 }
 0x54e   : > { %v1797_v32 = vadd.f32 %v2242_v15, %v1796_v10 }
 0x54f   : > { %v1860_v34 = vmax.f32 %v1802_v31, 0.0 }
 0x550   : > { %v1859_v33 = vmax.f32 %v1797_v32, 0.0 }
 0x552   : > { %2652 = vmatprep.mubr.msk.f32.mxu0 %vm532_vm0, %v1859_v33 }
 0x553   : > { %2653 = vmatmul.mubr.msk.f32.gmra.mrb[68].mxu0 %vm532_vm0, %v1860_v34 }
 0x554   : > { %v2625_v35 = vpop.f32.mrb[54].mxu1 }
 0x555   : > { %v1812_v36 = vadd.f32 %v2625_v35, %v2242_v15  ;;  %v1806_v37 = vpop.f32.mrb[55].mxu1 }
 0x556   : > { %v1807_v38 = vadd.f32 %v2242_v15, %v1806_v37 }
 0x557   : > { %v1862_v40 = vmax.f32 %v1812_v36, 0.0 }
 0x558   : > { %v1861_v39 = vmax.f32 %v1807_v38, 0.0 }
 0x55a   : > { %2655 = vmatprep.mubr.msk.f32.mxu0 %vm532_vm0, %v1861_v39 }
 0x55b   : > { %2656 = vmatmul.mubr.msk.f32.gmra.mrb[70].mxu0 %vm532_vm0, %v1862_v40 }
 0x55c   : > { %v2628_v41 = vpop.f32.mrb[56].mxu1 }
 0x55d   : > { %v1822_v42 = vadd.f32 %v2628_v41, %v2242_v15  ;;  %v1816_v43 = vpop.f32.mrb[57].mxu1 }
 0x55e   : > { %v1817_v44 = vadd.f32 %v2242_v15, %v1816_v43 }
 0x55f   : > { %v1864_v46 = vmax.f32 %v1822_v42, 0.0 }
 0x560   : > { %v1863_v45 = vmax.f32 %v1817_v44, 0.0 }
 0x562   : > { %2658 = vmatprep.mubr.msk.f32.mxu0 %vm532_vm0, %v1863_v45 }
 0x563   : > { %2659 = vmatmul.mubr.msk.f32.gmra.mrb[72].mxu0 %vm532_vm0, %v1864_v46 }
 0x564   : > { %v2631_v47 = vpop.f32.mrb[58].mxu1 }
 0x565   : > { %v1832_v48 = vadd.f32 %v2631_v47, %v2242_v15  ;;  %v1826_v49 = vpop.f32.mrb[59].mxu1 }
 0x566   : > { %v1827_v50 = vadd.f32 %v2242_v15, %v1826_v49 }
 0x567   : > { %v1866_v52 = vmax.f32 %v1832_v48, 0.0 }
 0x568   : > { %v1865_v51 = vmax.f32 %v1827_v50, 0.0 }
 0x56a   : > { %2661 = vmatprep.mubr.msk.f32.mxu0 %vm532_vm0, %v1865_v51 }
 0x56b   : > { %2662 = vmatmul.mubr.msk.f32.gmra.mrb[74].mxu0 %vm532_vm0, %v1866_v52 }
 0x56c   : > { %v2634_v53 = vpop.f32.mrb[60].mxu1 }
 0x56d   : > { %v1842_v54 = vadd.f32 %v2634_v53, %v2242_v15  ;;  %v1836_v55 = vpop.f32.mrb[61].mxu1 }
 0x56e   : > { %v1837_v56 = vadd.f32 %v2242_v15, %v1836_v55 }
 0x56f   : > { %v1868_v58 = vmax.f32 %v1842_v54, 0.0 }
 0x570   : > { %v1867_v57 = vmax.f32 %v1837_v56, 0.0 }
 0x572   : > { %2664 = vmatprep.mubr.msk.f32.mxu0 %vm532_vm0, %v1867_v57 }
 0x573   : > { %2665 = vmatmul.mubr.msk.f32.gmra.mrb[76].mxu0 %vm532_vm0, %v1868_v58 }
 0x574   : > { %v2637_v59 = vpop.f32.mrb[62].mxu1 }
 0x575   : > { %v1852_v60 = vadd.f32 %v2637_v59, %v2242_v15  ;;  %v1846_v61 = vpop.f32.mrb[63].mxu1 }
 0x576   : > { %v1847_v62 = vadd.f32 %v2242_v15, %v1846_v61 }
 0x577   : > { %v1870_v25 = vmax.f32 %v1852_v60, 0.0 }
 0x578   : > { %v1869_v24 = vmax.f32 %v1847_v62, 0.0 }
 0x57a   : > { %2667 = vmatprep.mubr.msk.f32.mxu1 %vm532_vm0, %v1869_v24 }
 0x57b   : > { %2668 = vmatmul.mubr.msk.f32.vlgmr.msra.gmra.mrb[64].mxu1 %vm532_vm0, %v1870_v25 }
 0x616   : > { %v2648_v0 = vpop.f32.mrb[64].mxu0 }
 0x617   : > { %v2002_v1 = vadd.f32 %v2648_v0, %v2259_v63  ;;  %v1996_v2 = vpop.f32.mrb[65].mxu0 }
 0x618   : > { %v1997_v3 = vadd.f32 %v2259_v63, %v1996_v2 }
 0x619   : > { %2076 = vst [vmem:[%s3464_s16 + $0x8] sm:$0xff] %v2002_v1 }
 0x61a   : > { %2075 = vst [vmem:[%s3464_s16] sm:$0xff] %v1997_v3 }
 0x61e   : > { %v2651_v4 = vpop.f32.mrb[66].mxu0 }
 0x61f   : > { %v2012_v5 = vadd.f32 %v2651_v4, %v2259_v63  ;;  %v2006_v6 = vpop.f32.mrb[67].mxu0 }
 0x620   : > { %v2007_v8 = vadd.f32 %v2259_v63, %v2006_v6 }
 0x621   : > { %2078 = vst [vmem:[%s3464_s16 + $0x18] sm:$0xff] %v2012_v5 }
 0x622   : > { %2077 = vst [vmem:[%s3464_s16 + $0x10] sm:$0xff] %v2007_v8 }
 0x626   : > { %v2654_v7 = vpop.f32.mrb[68].mxu0 }
 0x627   : > { %v2022_v9 = vadd.f32 %v2654_v7, %v2259_v63  ;;  %v2016_v11 = vpop.f32.mrb[69].mxu0 }
 0x628   : > { %v2017_v12 = vadd.f32 %v2259_v63, %v2016_v11 }
 0x629   : > { %2080 = vst [vmem:[%s3464_s16 + $0x28] sm:$0xff] %v2022_v9 }
 0x62a   : > { %2079 = vst [vmem:[%s3464_s16 + $0x20] sm:$0xff] %v2017_v12 }
 0x62e   : > { %v2657_v13 = vpop.f32.mrb[70].mxu0 }
 0x62f   : > { %v2032_v14 = vadd.f32 %v2657_v13, %v2259_v63  ;;  %v2026_v15 = vpop.f32.mrb[71].mxu0 }
 0x630   : > { %v2027_v16 = vadd.f32 %v2259_v63, %v2026_v15 }
 0x631   : > { %2082 = vst [vmem:[%s3464_s16 + $0x38] sm:$0xff] %v2032_v14 }
 0x632   : > { %2081 = vst [vmem:[%s3464_s16 + $0x30] sm:$0xff] %v2027_v16 }
 0x636   : > { %v2660_v17 = vpop.f32.mrb[72].mxu0 }
 0x637   : > { %v2042_v18 = vadd.f32 %v2660_v17, %v2259_v63  ;;  %v2036_v19 = vpop.f32.mrb[73].mxu0 }
 0x638   : > { %v2037_v20 = vadd.f32 %v2259_v63, %v2036_v19 }
 0x639   : > { %2084 = vst [vmem:[%s3464_s16 + $0x48] sm:$0xff] %v2042_v18 }
 0x63a   : > { %2083 = vst [vmem:[%s3464_s16 + $0x40] sm:$0xff] %v2037_v20 }
 0x63e   : > { %v2663_v21 = vpop.f32.mrb[74].mxu0 }
 0x63f   : > { %v2052_v22 = vadd.f32 %v2663_v21, %v2259_v63  ;;  %v2046_v23 = vpop.f32.mrb[75].mxu0 }
 0x640   : > { %v2047_v26 = vadd.f32 %v2259_v63, %v2046_v23 }
 0x641   : > { %2086 = vst [vmem:[%s3464_s16 + $0x58] sm:$0xff] %v2052_v22 }
 0x642   : > { %2085 = vst [vmem:[%s3464_s16 + $0x50] sm:$0xff] %v2047_v26 }
 0x646   : > { %v2666_v27 = vpop.f32.mrb[76].mxu0 }
 0x647   : > { %v2062_v28 = vadd.f32 %v2666_v27, %v2259_v63  ;;  %v2056_v29 = vpop.f32.mrb[77].mxu0 }
 0x648   : > { %v2057_v30 = vadd.f32 %v2259_v63, %v2056_v29 }
 0x649   : > { %2088 = vst [vmem:[%s3464_s16 + $0x68] sm:$0xff] %v2062_v28 }
 0x64a   : > { %2087 = vst [vmem:[%s3464_s16 + $0x60] sm:$0xff] %v2057_v30 }
 0x64e   : > { %v2669_v31 = vpop.f32.mrb[64].mxu1 }
 0x64f   : > { %v2072_v10 = vadd.f32 %v2669_v31, %v2259_v63  ;;  %v2066_v32 = vpop.f32.mrb[65].mxu1 }
 0x650   : > { %v2067_v33 = vadd.f32 %v2259_v63, %v2066_v32 }
 0x651   : > { %2090 = vst [vmem:[%s3464_s16 + $0x78] sm:$0xff] %v2072_v10 }
 0x652   : > { %2089 = vst [vmem:[%s3464_s16 + $0x70] sm:$0xff] %v2067_v33 }
 0x653   : > { %2841 = shalt.err (!%p2838_p3)
}
 0x654   : > { %s2842_s29 = scalar_lea.hbm %s3485_s20, 2048  ;;  %s2846_s30 = scalar_lea.hbm %s3549_s15, 4096 }
 0x655   : > { %p2843_p4 = scmp.ne.s32.totalorder %s3485_s20, %s2842_s29  ;;  %p2847_p9 = scmp.lt.u32.totalorder %s3485_s20, %s3549_s15 }
 0x656   : > { %p2848_p10 = scmp.lt.u32.totalorder %s2846_s30, %s2842_s29  ;;  %p2850_p12 = scmp.lt.u32.totalorder %s2842_s29, %s3485_s20 }
 0x657   : > { %p2844_p7 = pnand %p2843_p4, %p3014_p5 }
 0x658   : > { %p2849_p11 = por %p2848_p10, %p2847_p9 }
 0x659   : > { %p2845_p8 = pneg %p2844_p7 }
 0x65a   : > { %p2851_p13 = por %p2850_p12, %p2849_p11 }
 0x65c   : > { %p2852_p0 = pnand %p2851_p13, %p2845_p8 }
 0x65e   : > { %2855 = shalt.err (!%p2852_p0)
}
 0x65f   : > { %s2894_s22 = smov 128   ;;  %s2895_s18 = smov 8  }
 0x660   : > { %2786 = dma.vmem_to_hbm [thread:$0]  (%p3014_p5), %s3487_s17, 2048, %s3485_s20, %s3493_s24, %s2894_s22, %s2894_s22, %s2895_s18  }
 0x661 PF: > { %s3564_s1 = sld [smem:[#allocation5_spill]]  ;;  %p2792_p1 = scmp.ge.s32.totalorder %s2890_s21, 2 }
 0x663   : > { %p2789_p2 = pnand %p2792_p1, %p3018_p6 }
 0x667   : > { %s2120_s26 = sand.u32 1, %s3564_s1  }
 0x668   : > { %s2121_s29 = scalar_lea.sflag [#allocation3], %s2120_s26 }
 0x669   : > { %2873 = dma.done.wait (!%p2789_p2), %s2121_s29, 2048  }
 0x66a   : > { %2875 = vsyncadd (!%p2789_p2), %s2121_s29, 4294965248  ;;  %s3566_s21 = sld [smem:[#allocation7_spill]]  ;;  %s3567_s16 = sld [smem:[#allocation6_spill]] }
 0x66b   : > { %s3568_s20 = sld [smem:[#allocation8_spill]]  ;;  %s3569_s18 = smov %s2882_s19 }
 0x670   : > { %p25_p3 = scmp.ge.s32.totalorder %s3566_s21, 4   ;;  %s3570_s19 = smov %s3567_s16 }
 0x672   :  { %27 = sbr.rel (!%p25_p3) target bundleno = 5 (0x5), region = 115 }
 0x679   :  { %2126 = vsyncpa [#allocation3], 1 }
 0x67a   :  { %2128 = vsyncpa [#allocation3 + $0x1], 1 }

</bundles_post_ra>
